<compile_context>
chip_gen: v6e
topology: v6e:2x2x1
jax: 0.10.0
libtpu: 0.0.40
codegen_flags: <defaults>
</compile_context>

<pallas_src>
import jax
import jax.numpy as jnp
from jax.experimental import pallas as pl
from jax.experimental.pallas import tpu as pltpu


def _round_up(x, m):
    return ((x + m - 1) // m) * m


def _fused_mlp_kernel(x_ref, w1_ref, b1_ref, w2_ref, b2_ref,
                      w3_ref, b3_ref, w4_ref, b4_ref,
                      enc_ref, dec_ref):
    # x_ref: (block_m, K_pad); weights full-array resident in VMEM.
    # Encoder: Linear -> ReLU -> Linear -> ReLU
    h = jnp.dot(x_ref[...], w1_ref[...], preferred_element_type=jnp.float32)
    h = jnp.maximum(h + b1_ref[...], 0.0)
    enc = jnp.dot(h, w2_ref[...], preferred_element_type=jnp.float32)
    enc = jnp.maximum(enc + b2_ref[...], 0.0)
    enc_ref[...] = enc.astype(enc_ref.dtype)
    # Decoder: Linear -> ReLU -> Linear (no final ReLU)
    dh = jnp.dot(enc, w3_ref[...], preferred_element_type=jnp.float32)
    dh = jnp.maximum(dh + b3_ref[...], 0.0)
    dec = jnp.dot(dh, w4_ref[...], preferred_element_type=jnp.float32) + b4_ref[...]
    dec_ref[...] = dec.astype(dec_ref.dtype)


def feature_extractor_forward(params, x, is_dec=False, *, block_m_max=128):
    """Matches FeatureExtractor.forward(x, is_dec). One fused Pallas kernel."""
    (w1, b1), (w2, b2), (w3, b3), (w4, b4) = params
    M, K = x.shape
    H1 = w1.shape[1]          # 512
    E = w2.shape[1]           # embed_size
    H2 = w3.shape[1]          # 512
    assert w1.shape == (K, H1) and w2.shape == (H1, E)
    assert w3.shape == (E, H2) and w4.shape == (H2, K)

    # Lane-dense padding for the narrow input/output feature axis.
    K_pad = _round_up(K, 128)
    # Batch tiling: fill the MXU edge when batch allows, pad to tile multiple.
    block_m = min(block_m_max, _round_up(M, 8))
    M_pad = _round_up(M, block_m)

    x_p = jnp.pad(x, ((0, M_pad - M), (0, K_pad - K)))
    w1_p = jnp.pad(w1, ((0, K_pad - K), (0, 0)))
    w4_p = jnp.pad(w4, ((0, 0), (0, K_pad - K)))
    b4_p = jnp.pad(b4, ((0, 0), (0, K_pad - K)))

    dtype = x.dtype
    grid = (M_pad // block_m,)

    flops = 2 * M_pad * (K_pad * H1 + H1 * E + E * H2 + H2 * K_pad)
    bytes_weights = 4 * (K_pad * H1 + H1 * E + E * H2 + H2 * K_pad
                         + H1 + E + H2 + K_pad)
    bytes_io = 4 * M_pad * (K_pad + E + K_pad)
    cost = pl.CostEstimate(flops=flops, transcendentals=0,
                           bytes_accessed=bytes_weights + bytes_io)

    tile_map = lambda i: (i, 0)   # tiled over batch
    full_map = lambda i: (0, 0)   # weights/biases: constant block -> DMA hoisted

    enc_p, dec_p = pl.pallas_call(
        _fused_mlp_kernel,
        out_shape=(jax.ShapeDtypeStruct((M_pad, E), dtype),
                   jax.ShapeDtypeStruct((M_pad, K_pad), dtype)),
        grid_spec=pltpu.PrefetchScalarGridSpec(
            num_scalar_prefetch=0,
            grid=grid,
            in_specs=[
                pl.BlockSpec((block_m, K_pad), tile_map),   # x
                pl.BlockSpec((K_pad, H1), full_map),        # w1
                pl.BlockSpec((1, H1), full_map),            # b1
                pl.BlockSpec((H1, E), full_map),            # w2
                pl.BlockSpec((1, E), full_map),             # b2
                pl.BlockSpec((E, H2), full_map),            # w3
                pl.BlockSpec((1, H2), full_map),            # b3
                pl.BlockSpec((H2, K_pad), full_map),        # w4 (cols padded)
                pl.BlockSpec((1, K_pad), full_map),         # b4 (padded)
            ],
            out_specs=[
                pl.BlockSpec((block_m, E), tile_map),       # enc
                pl.BlockSpec((block_m, K_pad), tile_map),   # dec (padded cols)
            ],
        ),
        compiler_params=pltpu.CompilerParams(
            dimension_semantics=("parallel",)),
        cost_estimate=cost,
    )(x_p, w1_p, b1, w2, b2, w3, b3, w4_p, b4_p)

    enc = enc_p[:M]
    if is_dec:
        return enc, dec_p[:M, :K]
    return enc


def init_feature_extractor_params(key, num_inputs, embed_size=256):
    """Deterministic init mirroring nn.Linear default (uniform +/- 1/sqrt(fan_in))."""
    layer_dims = [
        (num_inputs, 512),     # feature_layers[0]
        (512, embed_size),     # feature_layers[2]
        (embed_size, 512),     # feature_decoder[0]
        (512, num_inputs),     # feature_decoder[2]
    ]
    params = []
    for fan_in, fan_out in layer_dims:
        key, kw, kb = jax.random.split(key, 3)
        bound = 1.0 / float(fan_in) ** 0.5
        w = jax.random.uniform(kw, (fan_in, fan_out), jnp.float32, -bound, bound)
        b = jax.random.uniform(kb, (1, fan_out), jnp.float32, -bound, bound)
        params.append((w, b))
    return params


def _reference_forward(params, x):
    (w1, b1), (w2, b2), (w3, b3), (w4, b4) = params
    h = jnp.maximum(x @ w1 + b1, 0.0)
    enc = jnp.maximum(h @ w2 + b2, 0.0)
    dec = jnp.maximum(enc @ w3 + b3, 0.0) @ w4 + b4
    return enc, dec


if __name__ == "__main__":
    batch = 8
    num_inputs = 32
    embed_size = 256

    key = jax.random.PRNGKey(0)
    key, xkey = jax.random.split(key)
    x = jax.random.normal(xkey, (batch, num_inputs), jnp.float32)
    params = init_feature_extractor_params(key, num_inputs, embed_size)

    enc, dec = feature_extractor_forward(params, x, is_dec=True)
    enc = jax.block_until_ready(enc)
    dec = jax.block_until_ready(dec)

    # is_dec=False path (still runs the same fused kernel; only enc returned).
    enc_only = jax.block_until_ready(feature_extractor_forward(params, x))

    enc_ref, dec_ref = _reference_forward(params, x)
    assert enc.shape == (batch, embed_size)
    assert dec.shape == (batch, num_inputs)
    assert jnp.allclose(enc, enc_ref, atol=1e-5, rtol=1e-5)
    assert jnp.allclose(dec, dec_ref, atol=1e-5, rtol=1e-5)
    assert jnp.allclose(enc_only, enc_ref, atol=1e-5, rtol=1e-5)

    print("KERNEL_OK")
</pallas_src>

<mosaic_0001>
module attributes {stable_mosaic.version = 11 : i64} {
  func.func @_fused_mlp_kernel(%arg0: i32, %arg1: memref<8x128xf32, #tpu.memory_space<vmem>>, %arg2: memref<128x512xf32, #tpu.memory_space<vmem>>, %arg3: memref<1x512xf32, #tpu.memory_space<vmem>>, %arg4: memref<512x256xf32, #tpu.memory_space<vmem>>, %arg5: memref<1x256xf32, #tpu.memory_space<vmem>>, %arg6: memref<256x512xf32, #tpu.memory_space<vmem>>, %arg7: memref<1x512xf32, #tpu.memory_space<vmem>>, %arg8: memref<512x128xf32, #tpu.memory_space<vmem>>, %arg9: memref<1x128xf32, #tpu.memory_space<vmem>>, %arg10: memref<8x256xf32, #tpu.memory_space<vmem>>, %arg11: memref<8x128xf32, #tpu.memory_space<vmem>>) attributes {dimension_semantics = [#tpu.dimension_semantics<parallel>], iteration_bounds = array<i64: 1>, scalar_prefetch = 0 : i64, scratch_operands = 0 : i64, tpu.core_type = #tpu.core_type<tc>, window_params = [{transform_indices = @transform_0, window_bounds = array<i64: 8, 128>}, {pipeline_mode = #tpu.pipeline_mode<synchronous>, transform_indices = @transform_1, window_bounds = array<i64: 128, 512>}, {pipeline_mode = #tpu.pipeline_mode<synchronous>, transform_indices = @transform_2, window_bounds = array<i64: 1, 512>}, {pipeline_mode = #tpu.pipeline_mode<synchronous>, transform_indices = @transform_3, window_bounds = array<i64: 512, 256>}, {pipeline_mode = #tpu.pipeline_mode<synchronous>, transform_indices = @transform_4, window_bounds = array<i64: 1, 256>}, {pipeline_mode = #tpu.pipeline_mode<synchronous>, transform_indices = @transform_5, window_bounds = array<i64: 256, 512>}, {pipeline_mode = #tpu.pipeline_mode<synchronous>, transform_indices = @transform_6, window_bounds = array<i64: 1, 512>}, {pipeline_mode = #tpu.pipeline_mode<synchronous>, transform_indices = @transform_7, window_bounds = array<i64: 512, 128>}, {pipeline_mode = #tpu.pipeline_mode<synchronous>, transform_indices = @transform_8, window_bounds = array<i64: 1, 128>}, {transform_indices = @transform_9, window_bounds = array<i64: 8, 256>}, {transform_indices = @transform_10, window_bounds = array<i64: 8, 128>}]} {
    %c0 = arith.constant 0 : index
    %c0_0 = arith.constant 0 : index
    %0 = vector.load %arg1[%c0, %c0_0] : memref<8x128xf32, #tpu.memory_space<vmem>>, vector<8x128xf32>
    %c0_1 = arith.constant 0 : index
    %c0_2 = arith.constant 0 : index
    %1 = vector.load %arg2[%c0_1, %c0_2] : memref<128x512xf32, #tpu.memory_space<vmem>>, vector<128x512xf32>
    %cst = arith.constant dense<0.000000e+00> : vector<8x512xf32>
    %2 = tpu.matmul %0, %1, %cst {dimension_numbers = #tpu.dot_dimension_numbers<[1], [0], [0], [1], [0, 0, 1, 1], [], []>} : vector<8x128xf32>, vector<128x512xf32>, vector<8x512xf32> -> vector<8x512xf32>
    %c0_3 = arith.constant 0 : index
    %c0_4 = arith.constant 0 : index
    %3 = vector.load %arg3[%c0_3, %c0_4] : memref<1x512xf32, #tpu.memory_space<vmem>>, vector<1x512xf32>
    %4 = vector.broadcast %3 : vector<1x512xf32> to vector<8x512xf32>
    %5 = arith.addf %2, %4 : vector<8x512xf32>
    %cst_5 = arith.constant 0.000000e+00 : f32
    %6 = vector.broadcast %cst_5 : f32 to vector<8x512xf32>
    %7 = arith.maximumf %5, %6 : vector<8x512xf32>
    %c0_6 = arith.constant 0 : index
    %c0_7 = arith.constant 0 : index
    %8 = vector.load %arg4[%c0_6, %c0_7] : memref<512x256xf32, #tpu.memory_space<vmem>>, vector<512x256xf32>
    %cst_8 = arith.constant dense<0.000000e+00> : vector<8x256xf32>
    %9 = tpu.matmul %7, %8, %cst_8 {dimension_numbers = #tpu.dot_dimension_numbers<[1], [0], [0], [1], [0, 0, 1, 1], [], []>} : vector<8x512xf32>, vector<512x256xf32>, vector<8x256xf32> -> vector<8x256xf32>
    %c0_9 = arith.constant 0 : index
    %c0_10 = arith.constant 0 : index
    %10 = vector.load %arg5[%c0_9, %c0_10] : memref<1x256xf32, #tpu.memory_space<vmem>>, vector<1x256xf32>
    %11 = vector.broadcast %10 : vector<1x256xf32> to vector<8x256xf32>
    %12 = arith.addf %9, %11 : vector<8x256xf32>
    %cst_11 = arith.constant 0.000000e+00 : f32
    %13 = vector.broadcast %cst_11 : f32 to vector<8x256xf32>
    %14 = arith.maximumf %12, %13 : vector<8x256xf32>
    %c0_12 = arith.constant 0 : index
    %c0_13 = arith.constant 0 : index
    %15 = vector.load %arg10[%c0_12, %c0_13] : memref<8x256xf32, #tpu.memory_space<vmem>>, vector<8x256xf32>
    tpu.vector_store %arg10[%c0_12, %c0_13], %14 {strides = array<i32>} : memref<8x256xf32, #tpu.memory_space<vmem>>, vector<8x256xf32>,
    %c0_14 = arith.constant 0 : index
    %c0_15 = arith.constant 0 : index
    %16 = vector.load %arg6[%c0_14, %c0_15] : memref<256x512xf32, #tpu.memory_space<vmem>>, vector<256x512xf32>
    %cst_16 = arith.constant dense<0.000000e+00> : vector<8x512xf32>
    %17 = tpu.matmul %14, %16, %cst_16 {dimension_numbers = #tpu.dot_dimension_numbers<[1], [0], [0], [1], [0, 0, 1, 1], [], []>} : vector<8x256xf32>, vector<256x512xf32>, vector<8x512xf32> -> vector<8x512xf32>
    %c0_17 = arith.constant 0 : index
    %c0_18 = arith.constant 0 : index
    %18 = vector.load %arg7[%c0_17, %c0_18] : memref<1x512xf32, #tpu.memory_space<vmem>>, vector<1x512xf32>
    %19 = vector.broadcast %18 : vector<1x512xf32> to vector<8x512xf32>
    %20 = arith.addf %17, %19 : vector<8x512xf32>
    %cst_19 = arith.constant 0.000000e+00 : f32
    %21 = vector.broadcast %cst_19 : f32 to vector<8x512xf32>
    %22 = arith.maximumf %20, %21 : vector<8x512xf32>
    %c0_20 = arith.constant 0 : index
    %c0_21 = arith.constant 0 : index
    %23 = vector.load %arg8[%c0_20, %c0_21] : memref<512x128xf32, #tpu.memory_space<vmem>>, vector<512x128xf32>
    %cst_22 = arith.constant dense<0.000000e+00> : vector<8x128xf32>
    %24 = tpu.matmul %22, %23, %cst_22 {dimension_numbers = #tpu.dot_dimension_numbers<[1], [0], [0], [1], [0, 0, 1, 1], [], []>} : vector<8x512xf32>, vector<512x128xf32>, vector<8x128xf32> -> vector<8x128xf32>
    %c0_23 = arith.constant 0 : index
    %c0_24 = arith.constant 0 : index
    %25 = vector.load %arg9[%c0_23, %c0_24] : memref<1x128xf32, #tpu.memory_space<vmem>>, vector<1x128xf32>
    %26 = vector.broadcast %25 : vector<1x128xf32> to vector<8x128xf32>
    %27 = arith.addf %24, %26 : vector<8x128xf32>
    %c0_25 = arith.constant 0 : index
    %c0_26 = arith.constant 0 : index
    %28 = vector.load %arg11[%c0_25, %c0_26] : memref<8x128xf32, #tpu.memory_space<vmem>>, vector<8x128xf32>
    tpu.vector_store %arg11[%c0_25, %c0_26], %27 {strides = array<i32>} : memref<8x128xf32, #tpu.memory_space<vmem>>, vector<8x128xf32>,
    return
  }
  func.func @transform_0(%arg0: i32) -> (i32, i32) {
    %c0_i32 = arith.constant 0 : i32
    %c0_i32_0 = arith.constant 0 : i32
    return %arg0, %c0_i32 : i32, i32
  }
  func.func @transform_1(%arg0: i32) -> (i32, i32) {
    %c0_i32 = arith.constant 0 : i32
    %c0_i32_0 = arith.constant 0 : i32
    %c0_i32_1 = arith.constant 0 : i32
    return %c0_i32, %c0_i32_0 : i32, i32
  }
  func.func @transform_2(%arg0: i32) -> (i32, i32) {
    %c0_i32 = arith.constant 0 : i32
    %c0_i32_0 = arith.constant 0 : i32
    %c0_i32_1 = arith.constant 0 : i32
    return %c0_i32, %c0_i32_0 : i32, i32
  }
  func.func @transform_3(%arg0: i32) -> (i32, i32) {
    %c0_i32 = arith.constant 0 : i32
    %c0_i32_0 = arith.constant 0 : i32
    %c0_i32_1 = arith.constant 0 : i32
    return %c0_i32, %c0_i32_0 : i32, i32
  }
  func.func @transform_4(%arg0: i32) -> (i32, i32) {
    %c0_i32 = arith.constant 0 : i32
    %c0_i32_0 = arith.constant 0 : i32
    %c0_i32_1 = arith.constant 0 : i32
    return %c0_i32, %c0_i32_0 : i32, i32
  }
  func.func @transform_5(%arg0: i32) -> (i32, i32) {
    %c0_i32 = arith.constant 0 : i32
    %c0_i32_0 = arith.constant 0 : i32
    %c0_i32_1 = arith.constant 0 : i32
    return %c0_i32, %c0_i32_0 : i32, i32
  }
  func.func @transform_6(%arg0: i32) -> (i32, i32) {
    %c0_i32 = arith.constant 0 : i32
    %c0_i32_0 = arith.constant 0 : i32
    %c0_i32_1 = arith.constant 0 : i32
    return %c0_i32, %c0_i32_0 : i32, i32
  }
  func.func @transform_7(%arg0: i32) -> (i32, i32) {
    %c0_i32 = arith.constant 0 : i32
    %c0_i32_0 = arith.constant 0 : i32
    %c0_i32_1 = arith.constant 0 : i32
    return %c0_i32, %c0_i32_0 : i32, i32
  }
  func.func @transform_8(%arg0: i32) -> (i32, i32) {
    %c0_i32 = arith.constant 0 : i32
    %c0_i32_0 = arith.constant 0 : i32
    %c0_i32_1 = arith.constant 0 : i32
    return %c0_i32, %c0_i32_0 : i32, i32
  }
  func.func @transform_9(%arg0: i32) -> (i32, i32) {
    %c0_i32 = arith.constant 0 : i32
    %c0_i32_0 = arith.constant 0 : i32
    return %arg0, %c0_i32 : i32, i32
  }
  func.func @transform_10(%arg0: i32) -> (i32, i32) {
    %c0_i32 = arith.constant 0 : i32
    %c0_i32_0 = arith.constant 0 : i32
    return %arg0, %c0_i32 : i32, i32
  }
}

</mosaic_0001>

<bundles_post_ra>
// kernel: tpu_custom_call.1
= control target key start
LH: loop header
LB: loop body
LE: loop exit
PB: predicated region body
PF: predicated region fallthrough
CT: control target
= control target key end

     0   :  { %16 = vsyncpa [#allocation3], 0  ;;  %s1564_s0 = inlined_call_operand.hbm [shape: f32[8,128], index: 0, kind: input, shape index: {}]   ;;  %s1565_s1 = inlined_call_operand.hbm [shape: f32[128,512], index: 1, kind: input, shape index: {}]   ;;  %s1566_s2 = inlined_call_operand.hbm [shape: f32[1,512], index: 2, kind: input, shape index: {}]   ;;  %s1567_s3 = inlined_call_operand.hbm [shape: f32[512,256], index: 3, kind: input, shape index: {}]   ;;  %s1568_s4 = inlined_call_operand.vmem [shape: f32[1,256], index: 4, kind: input, shape index: {}]   ;;  %s1569_s5 = inlined_call_operand.hbm [shape: f32[256,512], index: 5, kind: input, shape index: {}]   ;;  %s1570_s6 = inlined_call_operand.vmem [shape: f32[1,512], index: 6, kind: input, shape index: {}]   ;;  %s1571_s7 = inlined_call_operand.hbm [shape: f32[512,128], index: 7, kind: input, shape index: {}]   ;;  %s1572_s8 = inlined_call_operand.vmem [shape: f32[1,128], index: 8, kind: input, shape index: {}]   ;;  %s1573_s9 = inlined_call_operand.hbm [shape: f32[8,256], index: 9, kind: output, shape index: {0}]   ;;  %s1574_s10 = inlined_call_operand.hbm [shape: f32[8,128], index: 10, kind: output, shape index: {1}]  }
   0x1   :  { %17 = vsyncpa [#allocation6], 0 }
   0x2   :  { %18 = vsyncpa [#allocation9], 0 }
   0x3   :  { %19 = vsyncpa [#allocation12], 0 }
   0x4   :  { %20 = vsyncpa [#allocation4], 0 }
   0x5   :  { %21 = vsyncpa [#allocation15], 0  ;;  %s1431_s13 = smov [#allocation5]  }
   0x6   :  { %s37_s14 = sshll.u32 %s1431_s13, 4  ;;  %s38_s14 = int_to_ptr.vmem [resolvable:$true] %s37_s14 }
   0x7   :  { %s1267_s15 = scalar_lea.vmem %s38_s14, 8192  ;;  %p1272_p1 = scmp.lt.s32.totalorder %s38_s14, %s38_s14 }
   0x8   :  { %p1268_p0 = scmp.ne.s32.totalorder %s38_s14, %s1267_s15  ;;  %p1273_p2 = scmp.lt.s32.totalorder %s1267_s15, %s1267_s15 }
   0xa   :  { %p1274_p3 = por %p1273_p2, %p1272_p1 }
   0xc   :  { %p1275_p4 = pnand %p1274_p3, %p1268_p0 }
   0xe   :  { %1278 = shalt.err (!%p1275_p4)
}
   0xf   :  { %s1432_s16 = smov 512   ;;  %s1433_s17 = smov 32  }
  0x10   :  { %43 = dma.hbm_to_vmem [thread:$0]  %s1565_s1, 8192, %s38_s14, [#allocation6], %s1432_s16, %s1432_s16, %s1433_s17  }
  0x11   :  { %s1434_s20 = smov [#allocation8]  }
  0x12   :  { %s59_s21 = sshll.u32 %s1434_s20, 4  ;;  %s60_s21 = int_to_ptr.vmem [resolvable:$true] %s59_s21 }
  0x13   :  { %s1287_s22 = scalar_lea.vmem %s60_s21, 16384  ;;  %p1292_p6 = scmp.lt.s32.totalorder %s60_s21, %s60_s21 }
  0x14   :  { %p1288_p5 = scmp.ne.s32.totalorder %s60_s21, %s1287_s22  ;;  %p1293_p7 = scmp.lt.s32.totalorder %s1287_s22, %s1287_s22 }
  0x16   :  { %p1294_p8 = por %p1293_p7, %p1292_p6 }
  0x18   :  { %p1295_p9 = pnand %p1294_p8, %p1288_p5 }
  0x1a   :  { %1298 = shalt.err (!%p1295_p9)
}
  0x1b   :  { %s1435_s23 = smov 256   ;;  %s1436_s24 = smov 16  }
  0x1c   :  { %65 = dma.hbm_to_vmem [thread:$0]  %s1567_s3, 16384, %s60_s21, [#allocation9], %s1435_s23, %s1435_s23, %s1436_s24  }
  0x1d   :  { %s1437_s27 = smov [#allocation2]   ;;  %s1438_s29 = smov [#allocation7]  }
  0x1e   :  { %s28_s28 = sshll.u32 %s1437_s27, 4  ;;  %s50_s1 = sshll.u32 %s1438_s29, 4  ;;  %s29_s28 = int_to_ptr.vmem [resolvable:$true] %s28_s28  ;;  %s51_s1 = int_to_ptr.vmem [resolvable:$true] %s50_s1 }
  0x1f   :  { %s1307_s30 = scalar_lea.vmem %s29_s28, 128  ;;  %p1312_p11 = scmp.lt.s32.totalorder %s29_s28, %s29_s28 }
  0x20   :  { %p1308_p10 = scmp.ne.s32.totalorder %s29_s28, %s1307_s30  ;;  %p1313_p12 = scmp.lt.s32.totalorder %s1307_s30, %s1307_s30 }
  0x22   :  { %p1314_p13 = por %p1313_p12, %p1312_p11 }
  0x24   :  { %p1315_p0 = pnand %p1314_p13, %p1308_p10 }
  0x26   :  { %1318 = shalt.err (!%p1315_p0)
}
  0x27   :  { %31 = dma.hbm_to_vmem [thread:$0]  %s1564_s0, 128, %s29_s28, [#allocation3]  }
  0x28   :  { %s1327_s13 = scalar_lea.vmem %s51_s1, 64  ;;  %p1332_p2 = scmp.lt.s32.totalorder %s51_s1, %s51_s1 }
  0x29   :  { %p1328_p1 = scmp.ne.s32.totalorder %s51_s1, %s1327_s13  ;;  %p1333_p3 = scmp.lt.s32.totalorder %s1327_s13, %s1327_s13 }
  0x2b   :  { %p1334_p4 = por %p1333_p3, %p1332_p2 }
  0x2d   :  { %p1335_p5 = pnand %p1334_p4, %p1328_p1 }
  0x2f   :  { %1338 = shalt.err (!%p1335_p5)
}
  0x30   :  { %53 = dma.hbm_to_vmem [thread:$0]  %s1566_s2, 64, %s51_s1, [#allocation6]  }
  0x31   :  { %s1439_s15 = smov [#allocation10]   ;;  %s1440_s19 = smov [#allocation11]  }
  0x32   :  { %s73_s18 = sshll.u32 %s1439_s15, 4  ;;  %s87_s20 = sshll.u32 %s1440_s19, 4  ;;  %s74_s18 = int_to_ptr.vmem [resolvable:$true] %s73_s18  ;;  %s88_s20 = int_to_ptr.vmem [resolvable:$true] %s87_s20 }
  0x33   :  { %s1347_s21 = scalar_lea.vmem %s74_s18, 16384  ;;  %p1352_p7 = scmp.lt.s32.totalorder %s74_s18, %s74_s18 }
  0x34   :  { %p1348_p6 = scmp.ne.s32.totalorder %s74_s18, %s1347_s21  ;;  %p1353_p8 = scmp.lt.s32.totalorder %s1347_s21, %s1347_s21 }
  0x36   :  { %p1354_p9 = por %p1353_p8, %p1352_p7 }
  0x38   :  { %p1355_p10 = pnand %p1354_p9, %p1348_p6 }
  0x3a   :  { %1358 = shalt.err (!%p1355_p10)
}
  0x3b   :  { %79 = dma.hbm_to_vmem [thread:$0]  %s1569_s5, 16384, %s74_s18, [#allocation9], %s1432_s16, %s1432_s16, %s1433_s17  }
  0x3c   :  { %s1367_s2 = scalar_lea.vmem %s88_s20, 8192  ;;  %p1372_p12 = scmp.lt.s32.totalorder %s88_s20, %s88_s20 }
  0x3d   :  { %p1368_p11 = scmp.ne.s32.totalorder %s88_s20, %s1367_s2  ;;  %p1373_p13 = scmp.lt.s32.totalorder %s1367_s2, %s1367_s2 }
  0x3f   :  { %p1374_p0 = por %p1373_p13, %p1372_p12 }
  0x41   :  { %p1375_p1 = pnand %p1374_p0, %p1368_p11 }
  0x43   :  { %1378 = shalt.err (!%p1375_p1)
}
  0x44   :  { %s1441_s23 = smov 128   ;;  %s1442_s24 = smov 8  }
  0x45   :  { %93 = dma.hbm_to_vmem [thread:$0]  %s1571_s7, 8192, %s88_s20, [#allocation12], %s1441_s23, %s1441_s23, %s1442_s24  }
  0x46   :  { %1419 = dma.done.wait [#allocation3], 128  }
  0x47   :  { %1420 = vsyncadd [#allocation3], 4294967168 }
  0x48   :  { %1421 = dma.done.wait [#allocation6], 8256  }
  0x49   :  { %1422 = vsyncadd [#allocation6], 4294959040 }
  0x4a   :  { %1423 = dma.done.wait [#allocation9], 32768  }
  0x4b   :  { %1424 = vsyncadd [#allocation9], 4294934528 }
  0x4c   :  { %1425 = dma.done.wait [#allocation12], 8192  }
  0x4d   :  { %1426 = vsyncadd [#allocation12], 4294959104  ;;  %v1443_v0 = vmov 0.0   ;;  %v176_v1 = vld [vmem:[#allocation5 + $0x1e8] sm:$0xff]  ;;  %v178_v2 = vld [vmem:[#allocation5 + $0x1f8] sm:$0xff] }
  0x4e   :  { %265 = vmatprep.mubr.f32.mxu0 %v1443_v0  ;;  %336 = vmatprep.mubr.f32.mxu1 %v1443_v0  ;;  %v175_v3 = vld [vmem:[#allocation5 + $0x1e0] sm:$0xff]  ;;  %v177_v4 = vld [vmem:[#allocation5 + $0x1f0] sm:$0xff]  ;;  %v172_v5 = vld [vmem:[#allocation5 + $0x1c8] sm:$0xff] }
  0x4f   :  { %201 = vmatprep.subr.mxu0 %v176_v1  ;;  %272 = vmatprep.subr.mxu1 %v178_v2  ;;  %v174_v6 = vld [vmem:[#allocation5 + $0x1d8] sm:$0xff]  ;;  %v171_v7 = vld [vmem:[#allocation5 + $0x1c0] sm:$0xff]  ;;  %v173_v8 = vld [vmem:[#allocation5 + $0x1d0] sm:$0xff] }
  0x50   :  { %202 = vmatpush1.msra.mxu0 %v175_v3  ;;  %273 = vmatpush1.msra.mxu1 %v177_v4  ;;  %v168_v9 = vld [vmem:[#allocation5 + $0x1a8] sm:$0xff]  ;;  %v170_v10 = vld [vmem:[#allocation5 + $0x1b8] sm:$0xff]  ;;  %v167_v11 = vld [vmem:[#allocation5 + $0x1a0] sm:$0xff] }
  0x51   :  { %203 = vmatprep.subr.mxu0 %v172_v5  ;;  %274 = vmatprep.subr.mxu1 %v174_v6  ;;  %v169_v12 = vld [vmem:[#allocation5 + $0x1b0] sm:$0xff]  ;;  %v164_v13 = vld [vmem:[#allocation5 + $0x188] sm:$0xff]  ;;  %v166_v14 = vld [vmem:[#allocation5 + $0x198] sm:$0xff] }
  0x52   :  { %204 = vmatpush1.msra.mxu0 %v171_v7  ;;  %275 = vmatpush1.msra.mxu1 %v173_v8  ;;  %v163_v15 = vld [vmem:[#allocation5 + $0x180] sm:$0xff]  ;;  %v165_v16 = vld [vmem:[#allocation5 + $0x190] sm:$0xff]  ;;  %v160_v17 = vld [vmem:[#allocation5 + $0x168] sm:$0xff] }
  0x53   :  { %205 = vmatprep.subr.mxu0 %v168_v9  ;;  %276 = vmatprep.subr.mxu1 %v170_v10  ;;  %v162_v18 = vld [vmem:[#allocation5 + $0x178] sm:$0xff]  ;;  %v159_v19 = vld [vmem:[#allocation5 + $0x160] sm:$0xff]  ;;  %v161_v20 = vld [vmem:[#allocation5 + $0x170] sm:$0xff] }
  0x54   :  { %206 = vmatpush1.msra.mxu0 %v167_v11  ;;  %277 = vmatpush1.msra.mxu1 %v169_v12  ;;  %v156_v21 = vld [vmem:[#allocation5 + $0x148] sm:$0xff]  ;;  %v158_v22 = vld [vmem:[#allocation5 + $0x158] sm:$0xff]  ;;  %v155_v23 = vld [vmem:[#allocation5 + $0x140] sm:$0xff] }
  0x55   :  { %207 = vmatprep.subr.mxu0 %v164_v13  ;;  %278 = vmatprep.subr.mxu1 %v166_v14  ;;  %v157_v24 = vld [vmem:[#allocation5 + $0x150] sm:$0xff]  ;;  %v152_v25 = vld [vmem:[#allocation5 + $0x128] sm:$0xff]  ;;  %v154_v26 = vld [vmem:[#allocation5 + $0x138] sm:$0xff] }
  0x56   :  { %208 = vmatpush1.msra.mxu0 %v163_v15  ;;  %279 = vmatpush1.msra.mxu1 %v165_v16  ;;  %v151_v27 = vld [vmem:[#allocation5 + $0x120] sm:$0xff]  ;;  %v153_v28 = vld [vmem:[#allocation5 + $0x130] sm:$0xff]  ;;  %v148_v29 = vld [vmem:[#allocation5 + $0x108] sm:$0xff] }
  0x57   :  { %209 = vmatprep.subr.mxu0 %v160_v17  ;;  %280 = vmatprep.subr.mxu1 %v162_v18  ;;  %v150_v30 = vld [vmem:[#allocation5 + $0x118] sm:$0xff]  ;;  %v147_v31 = vld [vmem:[#allocation5 + $0x100] sm:$0xff]  ;;  %v149_v32 = vld [vmem:[#allocation5 + $0x110] sm:$0xff] }
  0x58   :  { %210 = vmatpush1.msra.mxu0 %v159_v19  ;;  %281 = vmatpush1.msra.mxu1 %v161_v20  ;;  %v144_v33 = vld [vmem:[#allocation5 + $0xe8] sm:$0xff]  ;;  %v146_v34 = vld [vmem:[#allocation5 + $0xf8] sm:$0xff]  ;;  %v143_v35 = vld [vmem:[#allocation5 + $0xe0] sm:$0xff] }
  0x59   :  { %211 = vmatprep.subr.mxu0 %v156_v21  ;;  %282 = vmatprep.subr.mxu1 %v158_v22  ;;  %v145_v36 = vld [vmem:[#allocation5 + $0xf0] sm:$0xff]  ;;  %v140_v37 = vld [vmem:[#allocation5 + $0xc8] sm:$0xff]  ;;  %v142_v38 = vld [vmem:[#allocation5 + $0xd8] sm:$0xff] }
  0x5a   :  { %212 = vmatpush1.msra.mxu0 %v155_v23  ;;  %283 = vmatpush1.msra.mxu1 %v157_v24  ;;  %v139_v39 = vld [vmem:[#allocation5 + $0xc0] sm:$0xff]  ;;  %v141_v40 = vld [vmem:[#allocation5 + $0xd0] sm:$0xff]  ;;  %v136_v41 = vld [vmem:[#allocation5 + $0xa8] sm:$0xff] }
  0x5b   :  { %213 = vmatprep.subr.mxu0 %v152_v25  ;;  %284 = vmatprep.subr.mxu1 %v154_v26  ;;  %v138_v42 = vld [vmem:[#allocation5 + $0xb8] sm:$0xff]  ;;  %v135_v43 = vld [vmem:[#allocation5 + $0xa0] sm:$0xff]  ;;  %v137_v44 = vld [vmem:[#allocation5 + $0xb0] sm:$0xff] }
  0x5c   :  { %214 = vmatpush1.msra.mxu0 %v151_v27  ;;  %285 = vmatpush1.msra.mxu1 %v153_v28  ;;  %v132_v45 = vld [vmem:[#allocation5 + $0x88] sm:$0xff]  ;;  %v134_v46 = vld [vmem:[#allocation5 + $0x98] sm:$0xff]  ;;  %v131_v47 = vld [vmem:[#allocation5 + $0x80] sm:$0xff] }
  0x5d   :  { %215 = vmatprep.subr.mxu0 %v148_v29  ;;  %286 = vmatprep.subr.mxu1 %v150_v30  ;;  %v133_v48 = vld [vmem:[#allocation5 + $0x90] sm:$0xff]  ;;  %v128_v49 = vld [vmem:[#allocation5 + $0x68] sm:$0xff]  ;;  %v130_v50 = vld [vmem:[#allocation5 + $0x78] sm:$0xff] }
  0x5e   :  { %216 = vmatpush1.msra.mxu0 %v147_v31  ;;  %287 = vmatpush1.msra.mxu1 %v149_v32  ;;  %v127_v51 = vld [vmem:[#allocation5 + $0x60] sm:$0xff]  ;;  %v129_v52 = vld [vmem:[#allocation5 + $0x70] sm:$0xff]  ;;  %v124_v53 = vld [vmem:[#allocation5 + $0x48] sm:$0xff] }
  0x5f   :  { %217 = vmatprep.subr.mxu0 %v144_v33  ;;  %288 = vmatprep.subr.mxu1 %v146_v34  ;;  %v126_v54 = vld [vmem:[#allocation5 + $0x58] sm:$0xff]  ;;  %v123_v55 = vld [vmem:[#allocation5 + $0x40] sm:$0xff]  ;;  %v125_v56 = vld [vmem:[#allocation5 + $0x50] sm:$0xff] }
  0x60   :  { %218 = vmatpush1.msra.mxu0 %v143_v35  ;;  %289 = vmatpush1.msra.mxu1 %v145_v36  ;;  %v120_v57 = vld [vmem:[#allocation5 + $0x28] sm:$0xff]  ;;  %v122_v58 = vld [vmem:[#allocation5 + $0x38] sm:$0xff]  ;;  %v119_v59 = vld [vmem:[#allocation5 + $0x20] sm:$0xff] }
  0x61   :  { %219 = vmatprep.subr.mxu0 %v140_v37  ;;  %290 = vmatprep.subr.mxu1 %v142_v38  ;;  %v121_v60 = vld [vmem:[#allocation5 + $0x30] sm:$0xff]  ;;  %v116_v61 = vld [vmem:[#allocation5 + $0x8] sm:$0xff]  ;;  %v118_v62 = vld [vmem:[#allocation5 + $0x18] sm:$0xff] }
  0x62   :  { %220 = vmatpush1.msra.mxu0 %v139_v39  ;;  %291 = vmatpush1.msra.mxu1 %v141_v40  ;;  %v115_v63 = vld [vmem:[#allocation5] sm:$0xff]  ;;  %v117_v0 = vld [vmem:[#allocation5 + $0x10] sm:$0xff]  ;;  %v114_v1 = vld [vmem:[#allocation2] sm:$0xff] }
  0x63   :  { %221 = vmatprep.subr.mxu0 %v136_v41  ;;  %292 = vmatprep.subr.mxu1 %v138_v42  ;;  %v378_v2 = vld [vmem:[#allocation8 + $0xf8] sm:$0xff]  ;;  %v377_v4 = vld [vmem:[#allocation8 + $0xf0] sm:$0xff]  ;;  %v376_v6 = vld [vmem:[#allocation8 + $0xe8] sm:$0xff] }
  0x64   :  { %222 = vmatpush1.msra.mxu0 %v135_v43  ;;  %293 = vmatpush1.msra.mxu1 %v137_v44  ;;  %v442_v3 = vld [vmem:[#allocation8 + $0x2f8] sm:$0xff]  ;;  %v441_v5 = vld [vmem:[#allocation8 + $0x2f0] sm:$0xff]  ;;  %v440_v7 = vld [vmem:[#allocation8 + $0x2e8] sm:$0xff] }
  0x65   :  { %223 = vmatprep.subr.mxu0 %v132_v45  ;;  %294 = vmatprep.subr.mxu1 %v134_v46  ;;  %v375_v8 = vld [vmem:[#allocation8 + $0xe0] sm:$0xff]  ;;  %v374_v10 = vld [vmem:[#allocation8 + $0xd8] sm:$0xff]  ;;  %v373_v12 = vld [vmem:[#allocation8 + $0xd0] sm:$0xff] }
  0x66   :  { %224 = vmatpush1.msra.mxu0 %v131_v47  ;;  %295 = vmatpush1.msra.mxu1 %v133_v48  ;;  %v439_v9 = vld [vmem:[#allocation8 + $0x2e0] sm:$0xff]  ;;  %v438_v11 = vld [vmem:[#allocation8 + $0x2d8] sm:$0xff]  ;;  %v437_v13 = vld [vmem:[#allocation8 + $0x2d0] sm:$0xff] }
  0x67   :  { %225 = vmatprep.subr.mxu0 %v128_v49  ;;  %296 = vmatprep.subr.mxu1 %v130_v50  ;;  %v372_v14 = vld [vmem:[#allocation8 + $0xc8] sm:$0xff]  ;;  %v371_v16 = vld [vmem:[#allocation8 + $0xc0] sm:$0xff]  ;;  %v370_v18 = vld [vmem:[#allocation8 + $0xb8] sm:$0xff] }
  0x68   :  { %226 = vmatpush1.msra.mxu0 %v127_v51  ;;  %297 = vmatpush1.msra.mxu1 %v129_v52  ;;  %v436_v15 = vld [vmem:[#allocation8 + $0x2c8] sm:$0xff]  ;;  %v435_v17 = vld [vmem:[#allocation8 + $0x2c0] sm:$0xff]  ;;  %v434_v19 = vld [vmem:[#allocation8 + $0x2b8] sm:$0xff] }
  0x69   :  { %227 = vmatprep.subr.mxu0 %v124_v53  ;;  %298 = vmatprep.subr.mxu1 %v126_v54  ;;  %v369_v20 = vld [vmem:[#allocation8 + $0xb0] sm:$0xff]  ;;  %v368_v22 = vld [vmem:[#allocation8 + $0xa8] sm:$0xff]  ;;  %v367_v24 = vld [vmem:[#allocation8 + $0xa0] sm:$0xff] }
  0x6a   :  { %228 = vmatpush1.msra.mxu0 %v123_v55  ;;  %299 = vmatpush1.msra.mxu1 %v125_v56  ;;  %v433_v21 = vld [vmem:[#allocation8 + $0x2b0] sm:$0xff]  ;;  %v432_v23 = vld [vmem:[#allocation8 + $0x2a8] sm:$0xff]  ;;  %v431_v25 = vld [vmem:[#allocation8 + $0x2a0] sm:$0xff] }
  0x6b   :  { %229 = vmatprep.subr.mxu0 %v120_v57  ;;  %300 = vmatprep.subr.mxu1 %v122_v58  ;;  %v366_v26 = vld [vmem:[#allocation8 + $0x98] sm:$0xff]  ;;  %v365_v28 = vld [vmem:[#allocation8 + $0x90] sm:$0xff]  ;;  %v364_v30 = vld [vmem:[#allocation8 + $0x88] sm:$0xff] }
  0x6c   :  { %230 = vmatpush1.msra.mxu0 %v119_v59  ;;  %301 = vmatpush1.msra.mxu1 %v121_v60  ;;  %v430_v27 = vld [vmem:[#allocation8 + $0x298] sm:$0xff]  ;;  %v429_v29 = vld [vmem:[#allocation8 + $0x290] sm:$0xff]  ;;  %v428_v31 = vld [vmem:[#allocation8 + $0x288] sm:$0xff] }
  0x6d   :  { %231 = vmatprep.subr.mxu0 %v116_v61  ;;  %302 = vmatprep.subr.mxu1 %v118_v62  ;;  %v363_v32 = vld [vmem:[#allocation8 + $0x80] sm:$0xff]  ;;  %v362_v34 = vld [vmem:[#allocation8 + $0x78] sm:$0xff]  ;;  %v361_v36 = vld [vmem:[#allocation8 + $0x70] sm:$0xff] }
  0x6e   :  { %232 = vmatpush1.msra.mxu0 %v115_v63  ;;  %303 = vmatpush1.msra.mxu1 %v117_v0  ;;  %v427_v33 = vld [vmem:[#allocation8 + $0x280] sm:$0xff]  ;;  %v426_v35 = vld [vmem:[#allocation8 + $0x278] sm:$0xff]  ;;  %v425_v37 = vld [vmem:[#allocation8 + $0x270] sm:$0xff] }
  0x6f   :  { %266 = vmatmul.mubr.f32.vlgmr.msra.gmra.mxu0 %v114_v1  ;;  %337 = vmatmul.mubr.f32.vlgmr.msra.gmra.mxu1 %v114_v1  ;;  %v360_v38 = vld [vmem:[#allocation8 + $0x68] sm:$0xff]  ;;  %v359_v40 = vld [vmem:[#allocation8 + $0x60] sm:$0xff]  ;;  %v358_v42 = vld [vmem:[#allocation8 + $0x58] sm:$0xff] }
  0x70   :  { %487 = vmatprep.subr.mxu0 %v378_v2  ;;  %558 = vmatprep.subr.mxu1 %v442_v3  ;;  %v424_v39 = vld [vmem:[#allocation8 + $0x268] sm:$0xff]  ;;  %v423_v41 = vld [vmem:[#allocation8 + $0x260] sm:$0xff]  ;;  %v422_v43 = vld [vmem:[#allocation8 + $0x258] sm:$0xff] }
  0x71   :  { %488 = vmatpush1.msra.mxu0 %v377_v4  ;;  %559 = vmatpush1.msra.mxu1 %v441_v5  ;;  %v357_v44 = vld [vmem:[#allocation8 + $0x50] sm:$0xff]  ;;  %v356_v46 = vld [vmem:[#allocation8 + $0x48] sm:$0xff]  ;;  %v355_v48 = vld [vmem:[#allocation8 + $0x40] sm:$0xff] }
  0x72   :  { %489 = vmatprep.subr.mxu0 %v376_v6  ;;  %560 = vmatprep.subr.mxu1 %v440_v7  ;;  %v421_v45 = vld [vmem:[#allocation8 + $0x250] sm:$0xff]  ;;  %v420_v47 = vld [vmem:[#allocation8 + $0x248] sm:$0xff]  ;;  %v419_v49 = vld [vmem:[#allocation8 + $0x240] sm:$0xff] }
  0x73   :  { %490 = vmatpush1.msra.mxu0 %v375_v8  ;;  %561 = vmatpush1.msra.mxu1 %v439_v9  ;;  %v354_v50 = vld [vmem:[#allocation8 + $0x38] sm:$0xff]  ;;  %v353_v52 = vld [vmem:[#allocation8 + $0x30] sm:$0xff]  ;;  %v352_v54 = vld [vmem:[#allocation8 + $0x28] sm:$0xff] }
  0x74   :  { %491 = vmatprep.subr.mxu0 %v374_v10  ;;  %562 = vmatprep.subr.mxu1 %v438_v11  ;;  %v418_v51 = vld [vmem:[#allocation8 + $0x238] sm:$0xff]  ;;  %v417_v53 = vld [vmem:[#allocation8 + $0x230] sm:$0xff]  ;;  %v416_v55 = vld [vmem:[#allocation8 + $0x228] sm:$0xff] }
  0x75   :  { %492 = vmatpush1.msra.mxu0 %v373_v12  ;;  %563 = vmatpush1.msra.mxu1 %v437_v13  ;;  %v351_v56 = vld [vmem:[#allocation8 + $0x20] sm:$0xff]  ;;  %v350_v58 = vld [vmem:[#allocation8 + $0x18] sm:$0xff]  ;;  %v349_v60 = vld [vmem:[#allocation8 + $0x10] sm:$0xff] }
  0x76   :  { %493 = vmatprep.subr.mxu0 %v372_v14  ;;  %564 = vmatprep.subr.mxu1 %v436_v15  ;;  %v415_v57 = vld [vmem:[#allocation8 + $0x220] sm:$0xff]  ;;  %v414_v59 = vld [vmem:[#allocation8 + $0x218] sm:$0xff]  ;;  %v413_v61 = vld [vmem:[#allocation8 + $0x210] sm:$0xff] }
  0x77   :  { %494 = vmatpush1.msra.mxu0 %v371_v16  ;;  %565 = vmatpush1.msra.mxu1 %v435_v17  ;;  %v348_v62 = vld [vmem:[#allocation8 + $0x8] sm:$0xff]  ;;  %v347_v0 = vld [vmem:[#allocation8] sm:$0xff]  ;;  %v410_v2 = vld [vmem:[#allocation8 + $0x1f8] sm:$0xff] }
  0x78   :  { %495 = vmatprep.subr.mxu0 %v370_v18  ;;  %566 = vmatprep.subr.mxu1 %v434_v19  ;;  %v412_v63 = vld [vmem:[#allocation8 + $0x208] sm:$0xff]  ;;  %v411_v1 = vld [vmem:[#allocation8 + $0x200] sm:$0xff]  ;;  %v474_v3 = vld [vmem:[#allocation8 + $0x3f8] sm:$0xff] }
  0x79   :  { %496 = vmatpush1.msra.mxu0 %v369_v20  ;;  %567 = vmatpush1.msra.mxu1 %v433_v21  ;;  %v409_v4 = vld [vmem:[#allocation8 + $0x1f0] sm:$0xff]  ;;  %v408_v6 = vld [vmem:[#allocation8 + $0x1e8] sm:$0xff]  ;;  %v407_v8 = vld [vmem:[#allocation8 + $0x1e0] sm:$0xff] }
  0x7a   :  { %497 = vmatprep.subr.mxu0 %v368_v22  ;;  %568 = vmatprep.subr.mxu1 %v432_v23  ;;  %v473_v5 = vld [vmem:[#allocation8 + $0x3f0] sm:$0xff]  ;;  %v472_v7 = vld [vmem:[#allocation8 + $0x3e8] sm:$0xff]  ;;  %v471_v9 = vld [vmem:[#allocation8 + $0x3e0] sm:$0xff] }
  0x7b   :  { %498 = vmatpush1.msra.mxu0 %v367_v24  ;;  %569 = vmatpush1.msra.mxu1 %v431_v25  ;;  %v406_v10 = vld [vmem:[#allocation8 + $0x1d8] sm:$0xff]  ;;  %v405_v12 = vld [vmem:[#allocation8 + $0x1d0] sm:$0xff]  ;;  %v404_v14 = vld [vmem:[#allocation8 + $0x1c8] sm:$0xff] }
  0x7c   :  { %499 = vmatprep.subr.mxu0 %v366_v26  ;;  %570 = vmatprep.subr.mxu1 %v430_v27  ;;  %v470_v11 = vld [vmem:[#allocation8 + $0x3d8] sm:$0xff]  ;;  %v469_v13 = vld [vmem:[#allocation8 + $0x3d0] sm:$0xff]  ;;  %v468_v15 = vld [vmem:[#allocation8 + $0x3c8] sm:$0xff] }
  0x7d   :  { %500 = vmatpush1.msra.mxu0 %v365_v28  ;;  %571 = vmatpush1.msra.mxu1 %v429_v29  ;;  %v403_v16 = vld [vmem:[#allocation8 + $0x1c0] sm:$0xff]  ;;  %v402_v18 = vld [vmem:[#allocation8 + $0x1b8] sm:$0xff]  ;;  %v401_v20 = vld [vmem:[#allocation8 + $0x1b0] sm:$0xff] }
  0x7e   :  { %501 = vmatprep.subr.mxu0 %v364_v30  ;;  %572 = vmatprep.subr.mxu1 %v428_v31  ;;  %v467_v17 = vld [vmem:[#allocation8 + $0x3c0] sm:$0xff]  ;;  %v466_v19 = vld [vmem:[#allocation8 + $0x3b8] sm:$0xff]  ;;  %v465_v21 = vld [vmem:[#allocation8 + $0x3b0] sm:$0xff] }
  0x7f   :  { %502 = vmatpush1.msra.mxu0 %v363_v32  ;;  %573 = vmatpush1.msra.mxu1 %v427_v33  ;;  %v400_v22 = vld [vmem:[#allocation8 + $0x1a8] sm:$0xff]  ;;  %v399_v24 = vld [vmem:[#allocation8 + $0x1a0] sm:$0xff]  ;;  %v398_v26 = vld [vmem:[#allocation8 + $0x198] sm:$0xff] }
  0x80   :  { %503 = vmatprep.subr.mxu0 %v362_v34  ;;  %574 = vmatprep.subr.mxu1 %v426_v35  ;;  %v464_v23 = vld [vmem:[#allocation8 + $0x3a8] sm:$0xff]  ;;  %v463_v25 = vld [vmem:[#allocation8 + $0x3a0] sm:$0xff]  ;;  %v462_v27 = vld [vmem:[#allocation8 + $0x398] sm:$0xff] }
  0x81   :  { %504 = vmatpush1.msra.mxu0 %v361_v36  ;;  %575 = vmatpush1.msra.mxu1 %v425_v37  ;;  %v397_v28 = vld [vmem:[#allocation8 + $0x190] sm:$0xff]  ;;  %v396_v30 = vld [vmem:[#allocation8 + $0x188] sm:$0xff]  ;;  %v395_v32 = vld [vmem:[#allocation8 + $0x180] sm:$0xff] }
  0x82   :  { %505 = vmatprep.subr.mxu0 %v360_v38  ;;  %576 = vmatprep.subr.mxu1 %v424_v39  ;;  %v461_v29 = vld [vmem:[#allocation8 + $0x390] sm:$0xff]  ;;  %v460_v31 = vld [vmem:[#allocation8 + $0x388] sm:$0xff]  ;;  %v459_v33 = vld [vmem:[#allocation8 + $0x380] sm:$0xff] }
  0x83   :  { %506 = vmatpush1.msra.mxu0 %v359_v40  ;;  %577 = vmatpush1.msra.mxu1 %v423_v41  ;;  %v394_v34 = vld [vmem:[#allocation8 + $0x178] sm:$0xff]  ;;  %v393_v36 = vld [vmem:[#allocation8 + $0x170] sm:$0xff]  ;;  %v392_v38 = vld [vmem:[#allocation8 + $0x168] sm:$0xff] }
  0x84   :  { %507 = vmatprep.subr.mxu0 %v358_v42  ;;  %578 = vmatprep.subr.mxu1 %v422_v43  ;;  %v458_v35 = vld [vmem:[#allocation8 + $0x378] sm:$0xff]  ;;  %v457_v37 = vld [vmem:[#allocation8 + $0x370] sm:$0xff]  ;;  %v456_v39 = vld [vmem:[#allocation8 + $0x368] sm:$0xff] }
  0x85   :  { %508 = vmatpush1.msra.mxu0 %v357_v44  ;;  %579 = vmatpush1.msra.mxu1 %v421_v45  ;;  %v391_v40 = vld [vmem:[#allocation8 + $0x160] sm:$0xff]  ;;  %v390_v42 = vld [vmem:[#allocation8 + $0x158] sm:$0xff]  ;;  %v389_v44 = vld [vmem:[#allocation8 + $0x150] sm:$0xff] }
  0x86   :  { %509 = vmatprep.subr.mxu0 %v356_v46  ;;  %580 = vmatprep.subr.mxu1 %v420_v47  ;;  %v455_v41 = vld [vmem:[#allocation8 + $0x360] sm:$0xff]  ;;  %v454_v43 = vld [vmem:[#allocation8 + $0x358] sm:$0xff]  ;;  %v453_v45 = vld [vmem:[#allocation8 + $0x350] sm:$0xff] }
  0x87   :  { %510 = vmatpush1.msra.mxu0 %v355_v48  ;;  %581 = vmatpush1.msra.mxu1 %v419_v49  ;;  %v388_v46 = vld [vmem:[#allocation8 + $0x148] sm:$0xff]  ;;  %v387_v48 = vld [vmem:[#allocation8 + $0x140] sm:$0xff] }
  0x88   :  { %511 = vmatprep.subr.mxu0 %v354_v50  ;;  %582 = vmatprep.subr.mxu1 %v418_v51  ;;  %v452_v47 = vld [vmem:[#allocation8 + $0x348] sm:$0xff]  ;;  %v451_v49 = vld [vmem:[#allocation8 + $0x340] sm:$0xff]  ;;  %v386_v50 = vld [vmem:[#allocation8 + $0x138] sm:$0xff] }
  0x89   :  { %512 = vmatpush1.msra.mxu0 %v353_v52  ;;  %583 = vmatpush1.msra.mxu1 %v417_v53  ;;  %v450_v51 = vld [vmem:[#allocation8 + $0x338] sm:$0xff]  ;;  %v385_v52 = vld [vmem:[#allocation8 + $0x130] sm:$0xff] }
  0x8a   :  { %513 = vmatprep.subr.mxu0 %v352_v54  ;;  %584 = vmatprep.subr.mxu1 %v416_v55  ;;  %v449_v53 = vld [vmem:[#allocation8 + $0x330] sm:$0xff]  ;;  %v384_v54 = vld [vmem:[#allocation8 + $0x128] sm:$0xff] }
  0x8b   :  { %514 = vmatpush1.msra.mxu0 %v351_v56  ;;  %585 = vmatpush1.msra.mxu1 %v415_v57  ;;  %v448_v55 = vld [vmem:[#allocation8 + $0x328] sm:$0xff]  ;;  %v383_v56 = vld [vmem:[#allocation8 + $0x120] sm:$0xff] }
  0x8c   :  { %515 = vmatprep.subr.mxu0 %v350_v58  ;;  %586 = vmatprep.subr.mxu1 %v414_v59  ;;  %v447_v57 = vld [vmem:[#allocation8 + $0x320] sm:$0xff]  ;;  %v382_v58 = vld [vmem:[#allocation8 + $0x118] sm:$0xff] }
  0x8d   :  { %516 = vmatpush1.msra.mxu0 %v349_v60  ;;  %587 = vmatpush1.msra.mxu1 %v413_v61  ;;  %v446_v59 = vld [vmem:[#allocation8 + $0x318] sm:$0xff]  ;;  %v381_v60 = vld [vmem:[#allocation8 + $0x110] sm:$0xff] }
  0x8e   :  { %517 = vmatprep.subr.mxu0 %v348_v62  ;;  %588 = vmatprep.subr.mxu1 %v412_v63  ;;  %v445_v61 = vld [vmem:[#allocation8 + $0x310] sm:$0xff]  ;;  %v380_v62 = vld [vmem:[#allocation8 + $0x108] sm:$0xff] }
  0x8f   :  { %518 = vmatpush1.msra.mxu0 %v347_v0  ;;  %589 = vmatpush1.msra.mxu1 %v411_v1  ;;  %v444_v63 = vld [vmem:[#allocation8 + $0x308] sm:$0xff]  ;;  %v379_v0 = vld [vmem:[#allocation8 + $0x100] sm:$0xff] }
  0x90   :  { %519 = vmatprep.subr.mxu0 %v410_v2  ;;  %590 = vmatprep.subr.mxu1 %v474_v3  ;;  %v443_v1 = vld [vmem:[#allocation8 + $0x300] sm:$0xff]  ;;  %v694_v2 = vld [vmem:[#allocation10 + $0x1e8] sm:$0xff]  ;;  %v696_v3 = vld [vmem:[#allocation10 + $0x1f8] sm:$0xff] }
  0x91   :  { %520 = vmatpush2.msra.mxu0 %v409_v4  ;;  %591 = vmatpush2.msra.mxu1 %v473_v5  ;;  %v181_v4 = vlaneseq }
  0x92   :  { %521 = vmatprep.subr.mxu0 %v408_v6  ;;  %592 = vmatprep.subr.mxu1 %v472_v7 }
  0x93   :  { %522 = vmatpush2.msra.mxu0 %v407_v8  ;;  %593 = vmatpush2.msra.mxu1 %v471_v9  ;;  %v1525_v5 = vshrl.u32 %v181_v4, 7  ;;  %v179_v8 = vld [vmem:[#allocation7] sm:$0xf]  ;;  %v655_v4 = vld [vmem:[#allocation10 + $0xb0] sm:$0xff] }
  0x94   :  { %523 = vmatprep.subr.mxu0 %v406_v10  ;;  %594 = vmatprep.subr.mxu1 %v470_v11 }
  0x95   :  { %524 = vmatpush2.msra.mxu0 %v405_v12  ;;  %595 = vmatpush2.msra.mxu1 %v469_v13  ;;  %v191_v6 = vsub.s32 2, %v1525_v5  ;;  %v1529_v7 = vsub.s32 0, %v1525_v5  ;;  %v1532_v9 = vsub.s32 1, %v1525_v5  ;;  %v195_v10 = vsub.s32 3, %v1525_v5 }
  0x96   :  { %525 = vmatprep.subr.mxu0 %v404_v14  ;;  %596 = vmatprep.subr.mxu1 %v468_v15 }
  0x97   :  { %526 = vmatpush2.msra.mxu0 %v403_v16  ;;  %597 = vmatpush2.msra.mxu1 %v467_v17  ;;  %v192_v11 = vrot.slane %v179_v8, %v191_v6  ;;  %v184_v12 = vrot.slane %v179_v8, %v1529_v7  ;;  %v188_v13 = vrot.slane %v179_v8, %v1532_v9 }
  0x98   :  { %527 = vmatprep.subr.mxu0 %v402_v18  ;;  %598 = vmatprep.subr.mxu1 %v466_v19  ;;  %v196_v14 = vrot.slane %v179_v8, %v195_v10  ;;  %v650_v8 = vld [vmem:[#allocation10 + $0x88] sm:$0xff] }
  0x99   :  { %528 = vmatpush2.msra.mxu0 %v401_v20  ;;  %599 = vmatpush2.msra.mxu1 %v465_v21 }
  0x9a   :  { %529 = vmatprep.subr.mxu0 %v400_v22  ;;  %600 = vmatprep.subr.mxu1 %v464_v23 }
  0x9b   :  { %530 = vmatpush2.msra.mxu0 %v399_v24  ;;  %601 = vmatpush2.msra.mxu1 %v463_v25 }
  0x9c   :  { %531 = vmatprep.subr.mxu0 %v398_v26  ;;  %602 = vmatprep.subr.mxu1 %v462_v27  ;;  %v693_v27 = vld [vmem:[#allocation10 + $0x1e0] sm:$0xff] }
  0x9d   :  { %532 = vmatpush2.msra.mxu0 %v397_v28  ;;  %603 = vmatpush2.msra.mxu1 %v461_v29  ;;  %v695_v28 = vld [vmem:[#allocation10 + $0x1f0] sm:$0xff]  ;;  %v690_v29 = vld [vmem:[#allocation10 + $0x1c8] sm:$0xff] }
  0x9e   :  { %533 = vmatprep.subr.mxu0 %v396_v30  ;;  %604 = vmatprep.subr.mxu1 %v460_v31  ;;  %v692_v30 = vld [vmem:[#allocation10 + $0x1d8] sm:$0xff]  ;;  %v689_v31 = vld [vmem:[#allocation10 + $0x1c0] sm:$0xff] }
  0x9f   :  { %534 = vmatpush2.msra.mxu0 %v395_v32  ;;  %605 = vmatpush2.msra.mxu1 %v459_v33  ;;  %v691_v32 = vld [vmem:[#allocation10 + $0x1d0] sm:$0xff]  ;;  %v686_v33 = vld [vmem:[#allocation10 + $0x1a8] sm:$0xff] }
  0xa0   :  { %535 = vmatprep.subr.mxu0 %v394_v34  ;;  %606 = vmatprep.subr.mxu1 %v458_v35  ;;  %v688_v34 = vld [vmem:[#allocation10 + $0x1b8] sm:$0xff]  ;;  %v685_v35 = vld [vmem:[#allocation10 + $0x1a0] sm:$0xff] }
  0xa1   :  { %536 = vmatpush2.msra.mxu0 %v393_v36  ;;  %607 = vmatpush2.msra.mxu1 %v457_v37  ;;  %v687_v36 = vld [vmem:[#allocation10 + $0x1b0] sm:$0xff]  ;;  %v682_v37 = vld [vmem:[#allocation10 + $0x188] sm:$0xff] }
  0xa2   :  { %537 = vmatprep.subr.mxu0 %v392_v38  ;;  %608 = vmatprep.subr.mxu1 %v456_v39  ;;  %v684_v38 = vld [vmem:[#allocation10 + $0x198] sm:$0xff]  ;;  %v681_v39 = vld [vmem:[#allocation10 + $0x180] sm:$0xff] }
  0xa3   :  { %538 = vmatpush2.msra.mxu0 %v391_v40  ;;  %609 = vmatpush2.msra.mxu1 %v455_v41  ;;  %v683_v40 = vld [vmem:[#allocation10 + $0x190] sm:$0xff]  ;;  %v678_v41 = vld [vmem:[#allocation10 + $0x168] sm:$0xff] }
  0xa4   :  { %539 = vmatprep.subr.mxu0 %v390_v42  ;;  %610 = vmatprep.subr.mxu1 %v454_v43  ;;  %v680_v42 = vld [vmem:[#allocation10 + $0x178] sm:$0xff]  ;;  %v677_v43 = vld [vmem:[#allocation10 + $0x160] sm:$0xff] }
  0xa5   :  { %540 = vmatpush2.msra.mxu0 %v389_v44  ;;  %611 = vmatpush2.msra.mxu1 %v453_v45  ;;  %v679_v44 = vld [vmem:[#allocation10 + $0x170] sm:$0xff]  ;;  %v674_v45 = vld [vmem:[#allocation10 + $0x148] sm:$0xff] }
  0xa6   :  { %541 = vmatprep.subr.mxu0 %v388_v46  ;;  %612 = vmatprep.subr.mxu1 %v452_v47  ;;  %v676_v46 = vld [vmem:[#allocation10 + $0x158] sm:$0xff]  ;;  %v673_v47 = vld [vmem:[#allocation10 + $0x140] sm:$0xff] }
  0xa7   :  { %542 = vmatpush2.msra.mxu0 %v387_v48  ;;  %613 = vmatpush2.msra.mxu1 %v451_v49  ;;  %v675_v48 = vld [vmem:[#allocation10 + $0x150] sm:$0xff]  ;;  %v670_v49 = vld [vmem:[#allocation10 + $0x128] sm:$0xff] }
  0xa8   :  { %543 = vmatprep.subr.mxu0 %v386_v50  ;;  %614 = vmatprep.subr.mxu1 %v450_v51  ;;  %v672_v50 = vld [vmem:[#allocation10 + $0x138] sm:$0xff]  ;;  %v669_v51 = vld [vmem:[#allocation10 + $0x120] sm:$0xff] }
  0xa9   :  { %544 = vmatpush2.msra.mxu0 %v385_v52  ;;  %615 = vmatpush2.msra.mxu1 %v449_v53  ;;  %v671_v52 = vld [vmem:[#allocation10 + $0x130] sm:$0xff]  ;;  %v666_v53 = vld [vmem:[#allocation10 + $0x108] sm:$0xff] }
  0xaa   :  { %545 = vmatprep.subr.mxu0 %v384_v54  ;;  %616 = vmatprep.subr.mxu1 %v448_v55  ;;  %v668_v54 = vld [vmem:[#allocation10 + $0x118] sm:$0xff]  ;;  %v665_v55 = vld [vmem:[#allocation10 + $0x100] sm:$0xff] }
  0xab   :  { %546 = vmatpush2.msra.mxu0 %v383_v56  ;;  %617 = vmatpush2.msra.mxu1 %v447_v57  ;;  %v667_v56 = vld [vmem:[#allocation10 + $0x110] sm:$0xff]  ;;  %v662_v57 = vld [vmem:[#allocation10 + $0xe8] sm:$0xff] }
  0xac   :  { %547 = vmatprep.subr.mxu0 %v382_v58  ;;  %618 = vmatprep.subr.mxu1 %v446_v59  ;;  %v664_v58 = vld [vmem:[#allocation10 + $0xf8] sm:$0xff]  ;;  %v661_v59 = vld [vmem:[#allocation10 + $0xe0] sm:$0xff] }
  0xad   :  { %548 = vmatpush2.msra.mxu0 %v381_v60  ;;  %619 = vmatpush2.msra.mxu1 %v445_v61  ;;  %v663_v60 = vld [vmem:[#allocation10 + $0xf0] sm:$0xff]  ;;  %v658_v61 = vld [vmem:[#allocation10 + $0xc8] sm:$0xff] }
  0xae   :  { %549 = vmatprep.subr.mxu0 %v380_v62  ;;  %620 = vmatprep.subr.mxu1 %v444_v63  ;;  %v660_v62 = vld [vmem:[#allocation10 + $0xd8] sm:$0xff]  ;;  %v657_v63 = vld [vmem:[#allocation10 + $0xc0] sm:$0xff] }
  0xaf   :  { %550 = vmatpush2.msra.mxu0 %v379_v0  ;;  %621 = vmatpush2.msra.mxu1 %v443_v1  ;;  %v659_v0 = vld [vmem:[#allocation10 + $0xd0] sm:$0xff]  ;;  %v654_v1 = vld [vmem:[#allocation10 + $0xa8] sm:$0xff] }
  0xb0   :  { %783 = vmatprep.subr.mxu0 %v694_v2  ;;  %854 = vmatprep.subr.mxu1 %v696_v3  ;;  %v656_v2 = vld [vmem:[#allocation10 + $0xb8] sm:$0xff]  ;;  %v653_v3 = vld [vmem:[#allocation10 + $0xa0] sm:$0xff] }
 0x12f   :  { %v267_v15 = vpop.f32.mrf.mxu0  ;;  %v338_v16 = vpop.f32.mrf.mxu1 }
 0x130   :  { %v339_v17 = vadd.f32 %v338_v16, %v192_v11  ;;  %v268_v18 = vadd.f32 %v267_v15, %v184_v12  ;;  %v652_v11 = vld [vmem:[#allocation10 + $0x98] sm:$0xff]  ;;  %v649_v12 = vld [vmem:[#allocation10 + $0x80] sm:$0xff] }
 0x131   :  { %v269_v19 = vpop.f32.mrf.mxu0  ;;  %v340_v20 = vpop.f32.mrf.mxu1  ;;  %v648_v15 = vld [vmem:[#allocation10 + $0x78] sm:$0xff]  ;;  %v645_v16 = vld [vmem:[#allocation10 + $0x60] sm:$0xff] }
 0x132   :  { %v270_v21 = vadd.f32 %v269_v19, %v188_v13  ;;  %v341_v22 = vadd.f32 %v340_v20, %v196_v14  ;;  %v345_v23 = vmax.f32 %v339_v17, 0.0  ;;  %v343_v26 = vmax.f32 %v268_v18, 0.0  ;;  %v651_v13 = vld [vmem:[#allocation10 + $0x90] sm:$0xff]  ;;  %v646_v14 = vld [vmem:[#allocation10 + $0x68] sm:$0xff]  ;;  %v644_v19 = vld [vmem:[#allocation10 + $0x58] sm:$0xff] }
 0x133   :  { %v647_v17 = vld [vmem:[#allocation10 + $0x70] sm:$0xff]  ;;  %v642_v18 = vld [vmem:[#allocation10 + $0x48] sm:$0xff]  ;;  %v641_v20 = vld [vmem:[#allocation10 + $0x40] sm:$0xff] }
 0x134   :  { %v344_v24 = vmax.f32 %v270_v21, 0.0  ;;  %v346_v25 = vmax.f32 %v341_v22, 0.0  ;;  %v643_v21 = vld [vmem:[#allocation10 + $0x50] sm:$0xff]  ;;  %v638_v22 = vld [vmem:[#allocation10 + $0x28] sm:$0xff] }
 0x136   :  { %551 = vmatprep.mubr.f32.mxu0 %v344_v24  ;;  %622 = vmatprep.mubr.f32.mxu1 %v346_v25  ;;  %v637_v24 = vld [vmem:[#allocation10 + $0x20] sm:$0xff]  ;;  %v639_v25 = vld [vmem:[#allocation10 + $0x30] sm:$0xff] }
 0x137   :  { %552 = vmatmul.mubr.f32.vlgmr.msra.gmra.mxu0 %v343_v26  ;;  %623 = vmatmul.mubr.f32.vlgmr.msra.gmra.mxu1 %v345_v23  ;;  %v640_v23 = vld [vmem:[#allocation10 + $0x38] sm:$0xff]  ;;  %v634_v26 = vld [vmem:[#allocation10 + $0x8] sm:$0xff] }
 0x138   :  { %784 = vmatpush1.msra.mxu0 %v693_v27  ;;  %855 = vmatpush1.msra.mxu1 %v695_v28  ;;  %v636_v27 = vld [vmem:[#allocation10 + $0x18] sm:$0xff]  ;;  %v633_v28 = vld [vmem:[#allocation10] sm:$0xff] }
 0x139   :  { %785 = vmatprep.subr.mxu0 %v690_v29  ;;  %856 = vmatprep.subr.mxu1 %v692_v30  ;;  %v635_v29 = vld [vmem:[#allocation10 + $0x10] sm:$0xff]  ;;  %v758_v30 = vld [vmem:[#allocation10 + $0x3e8] sm:$0xff] }
 0x13a   :  { %786 = vmatpush1.msra.mxu0 %v689_v31  ;;  %857 = vmatpush1.msra.mxu1 %v691_v32  ;;  %v760_v31 = vld [vmem:[#allocation10 + $0x3f8] sm:$0xff]  ;;  %v757_v32 = vld [vmem:[#allocation10 + $0x3e0] sm:$0xff] }
 0x13b   :  { %787 = vmatprep.subr.mxu0 %v686_v33  ;;  %858 = vmatprep.subr.mxu1 %v688_v34  ;;  %v759_v33 = vld [vmem:[#allocation10 + $0x3f0] sm:$0xff]  ;;  %v754_v34 = vld [vmem:[#allocation10 + $0x3c8] sm:$0xff] }
 0x13c   :  { %788 = vmatpush1.msra.mxu0 %v685_v35  ;;  %859 = vmatpush1.msra.mxu1 %v687_v36  ;;  %v756_v35 = vld [vmem:[#allocation10 + $0x3d8] sm:$0xff]  ;;  %v753_v36 = vld [vmem:[#allocation10 + $0x3c0] sm:$0xff] }
 0x13d   :  { %789 = vmatprep.subr.mxu0 %v682_v37  ;;  %860 = vmatprep.subr.mxu1 %v684_v38  ;;  %v755_v37 = vld [vmem:[#allocation10 + $0x3d0] sm:$0xff]  ;;  %v750_v38 = vld [vmem:[#allocation10 + $0x3a8] sm:$0xff] }
 0x13e   :  { %790 = vmatpush1.msra.mxu0 %v681_v39  ;;  %861 = vmatpush1.msra.mxu1 %v683_v40  ;;  %v752_v39 = vld [vmem:[#allocation10 + $0x3b8] sm:$0xff]  ;;  %v749_v40 = vld [vmem:[#allocation10 + $0x3a0] sm:$0xff] }
 0x13f   :  { %791 = vmatprep.subr.mxu0 %v678_v41  ;;  %862 = vmatprep.subr.mxu1 %v680_v42  ;;  %v751_v41 = vld [vmem:[#allocation10 + $0x3b0] sm:$0xff]  ;;  %v746_v42 = vld [vmem:[#allocation10 + $0x388] sm:$0xff] }
 0x140   :  { %792 = vmatpush1.msra.mxu0 %v677_v43  ;;  %863 = vmatpush1.msra.mxu1 %v679_v44  ;;  %v748_v43 = vld [vmem:[#allocation10 + $0x398] sm:$0xff]  ;;  %v745_v44 = vld [vmem:[#allocation10 + $0x380] sm:$0xff] }
 0x141   :  { %793 = vmatprep.subr.mxu0 %v674_v45  ;;  %864 = vmatprep.subr.mxu1 %v676_v46  ;;  %v747_v45 = vld [vmem:[#allocation10 + $0x390] sm:$0xff]  ;;  %v742_v46 = vld [vmem:[#allocation10 + $0x368] sm:$0xff] }
 0x142   :  { %794 = vmatpush1.msra.mxu0 %v673_v47  ;;  %865 = vmatpush1.msra.mxu1 %v675_v48  ;;  %v744_v47 = vld [vmem:[#allocation10 + $0x378] sm:$0xff]  ;;  %v741_v48 = vld [vmem:[#allocation10 + $0x360] sm:$0xff] }
 0x143   :  { %795 = vmatprep.subr.mxu0 %v670_v49  ;;  %866 = vmatprep.subr.mxu1 %v672_v50  ;;  %v743_v49 = vld [vmem:[#allocation10 + $0x370] sm:$0xff]  ;;  %v738_v50 = vld [vmem:[#allocation10 + $0x348] sm:$0xff] }
 0x144   :  { %796 = vmatpush1.msra.mxu0 %v669_v51  ;;  %867 = vmatpush1.msra.mxu1 %v671_v52  ;;  %v740_v51 = vld [vmem:[#allocation10 + $0x358] sm:$0xff]  ;;  %v737_v52 = vld [vmem:[#allocation10 + $0x340] sm:$0xff] }
 0x145   :  { %797 = vmatprep.subr.mxu0 %v666_v53  ;;  %868 = vmatprep.subr.mxu1 %v668_v54  ;;  %v739_v53 = vld [vmem:[#allocation10 + $0x350] sm:$0xff]  ;;  %v734_v54 = vld [vmem:[#allocation10 + $0x328] sm:$0xff] }
 0x146   :  { %798 = vmatpush1.msra.mxu0 %v665_v55  ;;  %869 = vmatpush1.msra.mxu1 %v667_v56  ;;  %v736_v55 = vld [vmem:[#allocation10 + $0x338] sm:$0xff]  ;;  %v733_v56 = vld [vmem:[#allocation10 + $0x320] sm:$0xff] }
 0x147   :  { %799 = vmatprep.subr.mxu0 %v662_v57  ;;  %870 = vmatprep.subr.mxu1 %v664_v58  ;;  %v735_v57 = vld [vmem:[#allocation10 + $0x330] sm:$0xff]  ;;  %v730_v58 = vld [vmem:[#allocation10 + $0x308] sm:$0xff] }
 0x148   :  { %800 = vmatpush1.msra.mxu0 %v661_v59  ;;  %871 = vmatpush1.msra.mxu1 %v663_v60  ;;  %v732_v59 = vld [vmem:[#allocation10 + $0x318] sm:$0xff]  ;;  %v729_v60 = vld [vmem:[#allocation10 + $0x300] sm:$0xff] }
 0x149   :  { %801 = vmatprep.subr.mxu0 %v658_v61  ;;  %872 = vmatprep.subr.mxu1 %v660_v62  ;;  %v731_v61 = vld [vmem:[#allocation10 + $0x310] sm:$0xff]  ;;  %v726_v62 = vld [vmem:[#allocation10 + $0x2e8] sm:$0xff] }
 0x14a   :  { %802 = vmatpush1.msra.mxu0 %v657_v63  ;;  %873 = vmatpush1.msra.mxu1 %v659_v0  ;;  %v728_v63 = vld [vmem:[#allocation10 + $0x2f8] sm:$0xff]  ;;  %v725_v0 = vld [vmem:[#allocation10 + $0x2e0] sm:$0xff] }
 0x14b   :  { %803 = vmatprep.subr.mxu0 %v654_v1  ;;  %874 = vmatprep.subr.mxu1 %v656_v2  ;;  %v727_v1 = vld [vmem:[#allocation10 + $0x2f0] sm:$0xff]  ;;  %v722_v2 = vld [vmem:[#allocation10 + $0x2c8] sm:$0xff] }
 0x14c   :  { %804 = vmatpush1.msra.mxu0 %v653_v3  ;;  %875 = vmatpush1.msra.mxu1 %v655_v4  ;;  %v724_v3 = vld [vmem:[#allocation10 + $0x2d8] sm:$0xff]  ;;  %v721_v4 = vld [vmem:[#allocation10 + $0x2c0] sm:$0xff] }
 0x14d   :  { %805 = vmatprep.subr.mxu0 %v650_v8  ;;  %876 = vmatprep.subr.mxu1 %v652_v11  ;;  %v723_v8 = vld [vmem:[#allocation10 + $0x2d0] sm:$0xff]  ;;  %v718_v11 = vld [vmem:[#allocation10 + $0x2a8] sm:$0xff] }
 0x14e   :  { %806 = vmatpush1.msra.mxu0 %v649_v12  ;;  %877 = vmatpush1.msra.mxu1 %v651_v13  ;;  %v720_v12 = vld [vmem:[#allocation10 + $0x2b8] sm:$0xff]  ;;  %v717_v13 = vld [vmem:[#allocation10 + $0x2a0] sm:$0xff] }
 0x14f   :  { %807 = vmatprep.subr.mxu0 %v646_v14  ;;  %878 = vmatprep.subr.mxu1 %v648_v15  ;;  %v719_v14 = vld [vmem:[#allocation10 + $0x2b0] sm:$0xff]  ;;  %v714_v15 = vld [vmem:[#allocation10 + $0x288] sm:$0xff] }
 0x150   :  { %808 = vmatpush1.msra.mxu0 %v645_v16  ;;  %879 = vmatpush1.msra.mxu1 %v647_v17  ;;  %v716_v16 = vld [vmem:[#allocation10 + $0x298] sm:$0xff]  ;;  %v713_v17 = vld [vmem:[#allocation10 + $0x280] sm:$0xff] }
 0x151   :  { %809 = vmatprep.subr.mxu0 %v642_v18  ;;  %880 = vmatprep.subr.mxu1 %v644_v19  ;;  %v715_v18 = vld [vmem:[#allocation10 + $0x290] sm:$0xff]  ;;  %v710_v19 = vld [vmem:[#allocation10 + $0x268] sm:$0xff] }
 0x152   :  { %810 = vmatpush1.msra.mxu0 %v641_v20  ;;  %881 = vmatpush1.msra.mxu1 %v643_v21  ;;  %v712_v20 = vld [vmem:[#allocation10 + $0x278] sm:$0xff]  ;;  %v709_v21 = vld [vmem:[#allocation10 + $0x260] sm:$0xff] }
 0x153   :  { %811 = vmatprep.subr.mxu0 %v638_v22  ;;  %882 = vmatprep.subr.mxu1 %v640_v23  ;;  %v711_v22 = vld [vmem:[#allocation10 + $0x270] sm:$0xff]  ;;  %v706_v23 = vld [vmem:[#allocation10 + $0x248] sm:$0xff] }
 0x154   :  { %812 = vmatpush1.msra.mxu0 %v637_v24  ;;  %883 = vmatpush1.msra.mxu1 %v639_v25  ;;  %v708_v24 = vld [vmem:[#allocation10 + $0x258] sm:$0xff]  ;;  %v705_v25 = vld [vmem:[#allocation10 + $0x240] sm:$0xff] }
 0x155   :  { %813 = vmatprep.subr.mxu0 %v634_v26  ;;  %884 = vmatprep.subr.mxu1 %v636_v27  ;;  %v707_v26 = vld [vmem:[#allocation10 + $0x250] sm:$0xff]  ;;  %v702_v27 = vld [vmem:[#allocation10 + $0x228] sm:$0xff] }
 0x156   :  { %814 = vmatpush1.msra.mxu0 %v633_v28  ;;  %885 = vmatpush1.msra.mxu1 %v635_v29  ;;  %v704_v28 = vld [vmem:[#allocation10 + $0x238] sm:$0xff]  ;;  %v701_v29 = vld [vmem:[#allocation10 + $0x220] sm:$0xff] }
 0x157   :  { %815 = vmatprep.subr.mxu0 %v758_v30  ;;  %886 = vmatprep.subr.mxu1 %v760_v31  ;;  %v703_v30 = vld [vmem:[#allocation10 + $0x230] sm:$0xff]  ;;  %v698_v31 = vld [vmem:[#allocation10 + $0x208] sm:$0xff] }
 0x158   :  { %816 = vmatpush2.msra.mxu0 %v757_v32  ;;  %887 = vmatpush2.msra.mxu1 %v759_v33  ;;  %v700_v32 = vld [vmem:[#allocation10 + $0x218] sm:$0xff]  ;;  %v697_v33 = vld [vmem:[#allocation10 + $0x200] sm:$0xff] }
 0x159   :  { %817 = vmatprep.subr.mxu0 %v754_v34  ;;  %888 = vmatprep.subr.mxu1 %v756_v35  ;;  %v699_v34 = vld [vmem:[#allocation10 + $0x210] sm:$0xff]  ;;  %v960_v35 = vld [vmem:[#allocation11 + $0xf8] sm:$0xff] }
 0x15a   :  { %818 = vmatpush2.msra.mxu0 %v753_v36  ;;  %889 = vmatpush2.msra.mxu1 %v755_v37  ;;  %v992_v36 = vld [vmem:[#allocation11 + $0x1f8] sm:$0xff]  ;;  %v475_v37 = vld [vmem:[%s1568_s4] sm:$0x3] }
 0x15b   :  { %819 = vmatprep.subr.mxu0 %v750_v38  ;;  %890 = vmatprep.subr.mxu1 %v752_v39  ;;  %v480_v38 = vrot.slane %v475_v37, %v1529_v7  ;;  %v484_v39 = vrot.slane %v475_v37, %v1532_v9  ;;  %v948_v37 = vld [vmem:[#allocation11 + $0x98] sm:$0xff] }
 0x15c   :  { %820 = vmatpush2.msra.mxu0 %v749_v40  ;;  %891 = vmatpush2.msra.mxu1 %v751_v41 }
 0x15d   :  { %821 = vmatprep.subr.mxu0 %v746_v42  ;;  %892 = vmatprep.subr.mxu1 %v748_v43 }
 0x15e   :  { %822 = vmatpush2.msra.mxu0 %v745_v44  ;;  %893 = vmatpush2.msra.mxu1 %v747_v45 }
 0x15f   :  { %823 = vmatprep.subr.mxu0 %v742_v46  ;;  %894 = vmatprep.subr.mxu1 %v744_v47 }
 0x160   :  { %824 = vmatpush2.msra.mxu0 %v741_v48  ;;  %895 = vmatpush2.msra.mxu1 %v743_v49 }
 0x161   :  { %825 = vmatprep.subr.mxu0 %v738_v50  ;;  %896 = vmatprep.subr.mxu1 %v740_v51  ;;  %v944_v50 = vld [vmem:[#allocation11 + $0x78] sm:$0xff] }
 0x162   :  { %826 = vmatpush2.msra.mxu0 %v737_v52  ;;  %897 = vmatpush2.msra.mxu1 %v739_v53  ;;  %v976_v51 = vld [vmem:[#allocation11 + $0x178] sm:$0xff]  ;;  %v959_v52 = vld [vmem:[#allocation11 + $0xf0] sm:$0xff] }
 0x163   :  { %827 = vmatprep.subr.mxu0 %v734_v54  ;;  %898 = vmatprep.subr.mxu1 %v736_v55  ;;  %v991_v53 = vld [vmem:[#allocation11 + $0x1f0] sm:$0xff] }
 0x164   :  { %828 = vmatpush2.msra.mxu0 %v733_v56  ;;  %899 = vmatpush2.msra.mxu1 %v735_v57  ;;  %v943_v54 = vld [vmem:[#allocation11 + $0x70] sm:$0xff]  ;;  %v958_v56 = vld [vmem:[#allocation11 + $0xe8] sm:$0xff] }
 0x165   :  { %829 = vmatprep.subr.mxu0 %v730_v58  ;;  %900 = vmatprep.subr.mxu1 %v732_v59  ;;  %v975_v55 = vld [vmem:[#allocation11 + $0x170] sm:$0xff]  ;;  %v990_v57 = vld [vmem:[#allocation11 + $0x1e8] sm:$0xff] }
 0x166   :  { %830 = vmatpush2.msra.mxu0 %v729_v60  ;;  %901 = vmatpush2.msra.mxu1 %v731_v61  ;;  %v942_v58 = vld [vmem:[#allocation11 + $0x68] sm:$0xff]  ;;  %v957_v60 = vld [vmem:[#allocation11 + $0xe0] sm:$0xff] }
 0x167   :  { %831 = vmatprep.subr.mxu0 %v726_v62  ;;  %902 = vmatprep.subr.mxu1 %v728_v63  ;;  %v974_v59 = vld [vmem:[#allocation11 + $0x168] sm:$0xff]  ;;  %v989_v61 = vld [vmem:[#allocation11 + $0x1e0] sm:$0xff] }
 0x168   :  { %832 = vmatpush2.msra.mxu0 %v725_v0  ;;  %903 = vmatpush2.msra.mxu1 %v727_v1  ;;  %v941_v62 = vld [vmem:[#allocation11 + $0x60] sm:$0xff]  ;;  %v956_v0 = vld [vmem:[#allocation11 + $0xd8] sm:$0xff] }
 0x169   :  { %833 = vmatprep.subr.mxu0 %v722_v2  ;;  %904 = vmatprep.subr.mxu1 %v724_v3  ;;  %v973_v63 = vld [vmem:[#allocation11 + $0x160] sm:$0xff]  ;;  %v988_v1 = vld [vmem:[#allocation11 + $0x1d8] sm:$0xff] }
 0x16a   :  { %834 = vmatpush2.msra.mxu0 %v721_v4  ;;  %905 = vmatpush2.msra.mxu1 %v723_v8  ;;  %v940_v2 = vld [vmem:[#allocation11 + $0x58] sm:$0xff]  ;;  %v955_v4 = vld [vmem:[#allocation11 + $0xd0] sm:$0xff] }
 0x16b   :  { %835 = vmatprep.subr.mxu0 %v718_v11  ;;  %906 = vmatprep.subr.mxu1 %v720_v12  ;;  %v972_v3 = vld [vmem:[#allocation11 + $0x158] sm:$0xff]  ;;  %v987_v8 = vld [vmem:[#allocation11 + $0x1d0] sm:$0xff] }
 0x16c   :  { %836 = vmatpush2.msra.mxu0 %v717_v13  ;;  %907 = vmatpush2.msra.mxu1 %v719_v14  ;;  %v939_v11 = vld [vmem:[#allocation11 + $0x50] sm:$0xff]  ;;  %v954_v13 = vld [vmem:[#allocation11 + $0xc8] sm:$0xff] }
 0x16d   :  { %837 = vmatprep.subr.mxu0 %v714_v15  ;;  %908 = vmatprep.subr.mxu1 %v716_v16  ;;  %v971_v12 = vld [vmem:[#allocation11 + $0x150] sm:$0xff]  ;;  %v986_v14 = vld [vmem:[#allocation11 + $0x1c8] sm:$0xff] }
 0x16e   :  { %838 = vmatpush2.msra.mxu0 %v713_v17  ;;  %909 = vmatpush2.msra.mxu1 %v715_v18  ;;  %v938_v15 = vld [vmem:[#allocation11 + $0x48] sm:$0xff]  ;;  %v953_v17 = vld [vmem:[#allocation11 + $0xc0] sm:$0xff] }
 0x16f   :  { %839 = vmatprep.subr.mxu0 %v710_v19  ;;  %910 = vmatprep.subr.mxu1 %v712_v20  ;;  %v970_v16 = vld [vmem:[#allocation11 + $0x148] sm:$0xff]  ;;  %v985_v18 = vld [vmem:[#allocation11 + $0x1c0] sm:$0xff] }
 0x170   :  { %840 = vmatpush2.msra.mxu0 %v709_v21  ;;  %911 = vmatpush2.msra.mxu1 %v711_v22  ;;  %v937_v19 = vld [vmem:[#allocation11 + $0x40] sm:$0xff]  ;;  %v952_v21 = vld [vmem:[#allocation11 + $0xb8] sm:$0xff] }
 0x171   :  { %841 = vmatprep.subr.mxu0 %v706_v23  ;;  %912 = vmatprep.subr.mxu1 %v708_v24  ;;  %v969_v20 = vld [vmem:[#allocation11 + $0x140] sm:$0xff]  ;;  %v984_v22 = vld [vmem:[#allocation11 + $0x1b8] sm:$0xff] }
 0x172   :  { %842 = vmatpush2.msra.mxu0 %v705_v25  ;;  %913 = vmatpush2.msra.mxu1 %v707_v26  ;;  %v936_v23 = vld [vmem:[#allocation11 + $0x38] sm:$0xff]  ;;  %v951_v25 = vld [vmem:[#allocation11 + $0xb0] sm:$0xff] }
 0x173   :  { %843 = vmatprep.subr.mxu0 %v702_v27  ;;  %914 = vmatprep.subr.mxu1 %v704_v28  ;;  %v968_v24 = vld [vmem:[#allocation11 + $0x138] sm:$0xff]  ;;  %v983_v26 = vld [vmem:[#allocation11 + $0x1b0] sm:$0xff] }
 0x174   :  { %844 = vmatpush2.msra.mxu0 %v701_v29  ;;  %915 = vmatpush2.msra.mxu1 %v703_v30  ;;  %v935_v27 = vld [vmem:[#allocation11 + $0x30] sm:$0xff]  ;;  %v950_v29 = vld [vmem:[#allocation11 + $0xa8] sm:$0xff] }
 0x175   :  { %845 = vmatprep.subr.mxu0 %v698_v31  ;;  %916 = vmatprep.subr.mxu1 %v700_v32  ;;  %v967_v28 = vld [vmem:[#allocation11 + $0x130] sm:$0xff]  ;;  %v982_v30 = vld [vmem:[#allocation11 + $0x1a8] sm:$0xff] }
 0x176   :  { %846 = vmatpush2.msra.mxu0 %v697_v33  ;;  %917 = vmatpush2.msra.mxu1 %v699_v34  ;;  %v934_v31 = vld [vmem:[#allocation11 + $0x28] sm:$0xff]  ;;  %v949_v33 = vld [vmem:[#allocation11 + $0xa0] sm:$0xff] }
 0x177   :  { %1174 = vmatprep.subr.mxu0 %v960_v35  ;;  %1209 = vmatprep.subr.mxu1 %v992_v36  ;;  %v966_v32 = vld [vmem:[#allocation11 + $0x128] sm:$0xff]  ;;  %v981_v34 = vld [vmem:[#allocation11 + $0x1a0] sm:$0xff] }
 0x178   :  { %v933_v35 = vld [vmem:[#allocation11 + $0x20] sm:$0xff] }
 0x179   :  { %v965_v36 = vld [vmem:[#allocation11 + $0x120] sm:$0xff] }
 0x1f7   :  { %v553_v40 = vpop.f32.mrf.mxu0  ;;  %v624_v41 = vpop.f32.mrf.mxu1 }
 0x1f8   :  { %v554_v42 = vadd.f32 %v553_v40, %v480_v38  ;;  %v980_v38 = vld [vmem:[#allocation11 + $0x198] sm:$0xff] }
 0x1f9   :  { %v555_v43 = vpop.f32.mrf.mxu0  ;;  %v626_v46 = vpop.f32.mrf.mxu1  ;;  %v964_v40 = vld [vmem:[#allocation11 + $0x118] sm:$0xff] }
 0x1fa   :  { %v625_v44 = vadd.f32 %v624_v41, %v554_v42  ;;  %v556_v45 = vadd.f32 %v555_v43, %v484_v39  ;;  %v932_v39 = vld [vmem:[#allocation11 + $0x18] sm:$0xff]  ;;  %v947_v41 = vld [vmem:[#allocation11 + $0x90] sm:$0xff] }
 0x1fb   :  { %v979_v42 = vld [vmem:[#allocation11 + $0x190] sm:$0xff] }
 0x1fc   :  { %v629_v47 = vmax.f32 %v625_v44, 0.0  ;;  %v627_v48 = vadd.f32 %v626_v46, %v556_v45  ;;  %v931_v43 = vld [vmem:[#allocation11 + $0x10] sm:$0xff]  ;;  %v946_v45 = vld [vmem:[#allocation11 + $0x88] sm:$0xff] }
 0x1fd   :  { %v963_v44 = vld [vmem:[#allocation11 + $0x110] sm:$0xff]  ;;  %v978_v46 = vld [vmem:[#allocation11 + $0x188] sm:$0xff] }
 0x1fe   :  { %631 = vst [vmem:[#allocation13] sm:$0xff] %v629_v47  ;;  %v630_v49 = vmax.f32 %v627_v48, 0.0  ;;  %v962_v48 = vld [vmem:[#allocation11 + $0x108] sm:$0xff] }
 0x200   :  { %632 = vst [vmem:[#allocation13 + $0x8] sm:$0xff] %v630_v49  ;;  %847 = vmatprep.mubr.f32.mxu0 %v630_v49  ;;  %918 = vmatprep.mubr.f32.mxu1 %v630_v49  ;;  %v945_v49 = vld [vmem:[#allocation11 + $0x80] sm:$0xff] }
 0x201   :  { %848 = vmatmul.mubr.f32.vlgmr.msra.gmra.mxu0 %v629_v47  ;;  %919 = vmatmul.mubr.f32.vlgmr.msra.gmra.mxu1 %v629_v47  ;;  %v930_v47 = vld [vmem:[#allocation11 + $0x8] sm:$0xff] }
 0x202   :  { %1175 = vmatpush3.msra.mxu0 %v944_v50  ;;  %1210 = vmatpush3.msra.mxu1 %v976_v51  ;;  %v977_v50 = vld [vmem:[#allocation11 + $0x180] sm:$0xff] }
 0x203   :  { %1176 = vmatprep.subr.mxu0 %v959_v52  ;;  %1211 = vmatprep.subr.mxu1 %v991_v53  ;;  %v929_v51 = vld [vmem:[#allocation11] sm:$0xff]  ;;  %v761_v53 = vld [vmem:[%s1570_s6] sm:$0xf]  ;;  %s1444_s6 = smov [#allocation13]  }
 0x204   :  { %1177 = vmatpush3.msra.mxu0 %v943_v54  ;;  %1212 = vmatpush3.msra.mxu1 %v975_v55  ;;  %v961_v52 = vld [vmem:[#allocation11 + $0x100] sm:$0xff]  ;;  %v766_v54 = vrot.slane %v761_v53, %v1529_v7  ;;  %v774_v55 = vrot.slane %v761_v53, %v191_v6  ;;  %s1147_s17 = sshll.u32 %s1444_s6, 4  ;;  %s1148_s17 = int_to_ptr.vmem [resolvable:$true] %s1147_s17 }
 0x205   :  { %1178 = vmatprep.subr.mxu0 %v958_v56  ;;  %1213 = vmatprep.subr.mxu1 %v990_v57  ;;  %v770_v56 = vrot.slane %v761_v53, %v1532_v9  ;;  %v778_v57 = vrot.slane %v761_v53, %v195_v10  ;;  %s1379_s27 = scalar_lea.vmem %s1148_s17, 256  ;;  %p1384_p3 = scmp.lt.s32.totalorder %s1148_s17, %s1148_s17 }
 0x206   :  { %1179 = vmatpush3.msra.mxu0 %v942_v58  ;;  %1214 = vmatpush3.msra.mxu1 %v974_v59  ;;  %p1380_p2 = scmp.ne.s32.totalorder %s1148_s17, %s1379_s27  ;;  %p1385_p4 = scmp.lt.s32.totalorder %s1379_s27, %s1379_s27 }
 0x207   :  { %1180 = vmatprep.subr.mxu0 %v957_v60  ;;  %1215 = vmatprep.subr.mxu1 %v989_v61 }
 0x208   :  { %1181 = vmatpush3.msra.mxu0 %v941_v62  ;;  %1216 = vmatpush3.msra.mxu1 %v973_v63  ;;  %p1386_p5 = por %p1385_p4, %p1384_p3 }
 0x209   :  { %1182 = vmatprep.subr.mxu0 %v956_v0  ;;  %1217 = vmatprep.subr.mxu1 %v988_v1 }
 0x20a   :  { %1183 = vmatpush3.msra.mxu0 %v940_v2  ;;  %1218 = vmatpush3.msra.mxu1 %v972_v3  ;;  %p1387_p6 = pnand %p1386_p5, %p1380_p2 }
 0x20b   :  { %1184 = vmatprep.subr.mxu0 %v955_v4  ;;  %1219 = vmatprep.subr.mxu1 %v987_v8 }
 0x20c   :  { %1185 = vmatpush3.msra.mxu0 %v939_v11  ;;  %1220 = vmatpush3.msra.mxu1 %v971_v12 }
 0x20d   :  { %1186 = vmatprep.subr.mxu0 %v954_v13  ;;  %1221 = vmatprep.subr.mxu1 %v986_v14 }
 0x20e   :  { %1187 = vmatpush3.msra.mxu0 %v938_v15  ;;  %1222 = vmatpush3.msra.mxu1 %v970_v16 }
 0x20f   :  { %1188 = vmatprep.subr.mxu0 %v953_v17  ;;  %1223 = vmatprep.subr.mxu1 %v985_v18 }
 0x210   :  { %1189 = vmatpush3.msra.mxu0 %v937_v19  ;;  %1224 = vmatpush3.msra.mxu1 %v969_v20 }
 0x211   :  { %1190 = vmatprep.subr.mxu0 %v952_v21  ;;  %1225 = vmatprep.subr.mxu1 %v984_v22 }
 0x212   :  { %1191 = vmatpush3.msra.mxu0 %v936_v23  ;;  %1226 = vmatpush3.msra.mxu1 %v968_v24 }
 0x213   :  { %1192 = vmatprep.subr.mxu0 %v951_v25  ;;  %1227 = vmatprep.subr.mxu1 %v983_v26 }
 0x214   :  { %1193 = vmatpush3.msra.mxu0 %v935_v27  ;;  %1228 = vmatpush3.msra.mxu1 %v967_v28 }
 0x215   :  { %1194 = vmatprep.subr.mxu0 %v950_v29  ;;  %1229 = vmatprep.subr.mxu1 %v982_v30 }
 0x216   :  { %1195 = vmatpush3.msra.mxu0 %v934_v31  ;;  %1230 = vmatpush3.msra.mxu1 %v966_v32 }
 0x217   :  { %1196 = vmatprep.subr.mxu0 %v949_v33  ;;  %1231 = vmatprep.subr.mxu1 %v981_v34 }
 0x218   :  { %1197 = vmatpush3.msra.mxu0 %v933_v35  ;;  %1232 = vmatpush3.msra.mxu1 %v965_v36 }
 0x219   :  { %1198 = vmatprep.subr.mxu0 %v948_v37  ;;  %1233 = vmatprep.subr.mxu1 %v980_v38 }
 0x21a   :  { %1199 = vmatpush3.msra.mxu0 %v932_v39  ;;  %1234 = vmatpush3.msra.mxu1 %v964_v40 }
 0x21b   :  { %1200 = vmatprep.subr.mxu0 %v947_v41  ;;  %1235 = vmatprep.subr.mxu1 %v979_v42 }
 0x21c   :  { %1201 = vmatpush3.msra.mxu0 %v931_v43  ;;  %1236 = vmatpush3.msra.mxu1 %v963_v44 }
 0x21d   :  { %1202 = vmatprep.subr.mxu0 %v946_v45  ;;  %1237 = vmatprep.subr.mxu1 %v978_v46 }
 0x21e   :  { %1203 = vmatpush3.msra.mxu0 %v930_v47  ;;  %1238 = vmatpush3.msra.mxu1 %v962_v48 }
 0x21f   :  { %1204 = vmatprep.subr.mxu0 %v945_v49  ;;  %1239 = vmatprep.subr.mxu1 %v977_v50 }
 0x220   :  { %1205 = vmatpush3.msra.mxu0 %v929_v51  ;;  %1240 = vmatpush3.msra.mxu1 %v961_v52 }
 0x2c1   :  { %v849_v58 = vpop.f32.mrf.mxu0  ;;  %v920_v59 = vpop.f32.mrf.mxu1 }
 0x2c2   :  { %v850_v60 = vadd.f32 %v849_v58, %v766_v54  ;;  %v921_v61 = vadd.f32 %v920_v59, %v774_v55 }
 0x2c3   :  { %v851_v62 = vpop.f32.mrf.mxu0  ;;  %v922_v63 = vpop.f32.mrf.mxu1 }
 0x2c4   :  { %v852_v0 = vadd.f32 %v851_v62, %v770_v56  ;;  %v923_v1 = vadd.f32 %v922_v63, %v778_v57  ;;  %v925_v4 = vmax.f32 %v850_v60, 0.0  ;;  %v927_v7 = vmax.f32 %v921_v61, 0.0 }
 0x2c6   :  { %v926_v2 = vmax.f32 %v852_v0, 0.0  ;;  %v928_v3 = vmax.f32 %v923_v1, 0.0 }
 0x2c8   :  { %1064 = vmatprep.mubr.f32.mxu0 %v926_v2  ;;  %1134 = vmatprep.mubr.f32.mxu1 %v928_v3 }
 0x2c9   :  { %1065 = vmatmul.mubr.f32.vlgmr.msra.gmra.mxu0 %v925_v4  ;;  %1135 = vmatmul.mubr.f32.vlgmr.msra.gmra.mxu1 %v927_v7 }
 0x2ca   :  { %1390 = shalt.err (!%p1387_p6)
}
 0x2cb   :  { %1150 = dma.vmem_to_hbm [thread:$0]  %s1148_s17, 256, %s1573_s9, [#allocation4]   ;;  %v1173_v9 = vld [vmem:[%s1572_s8] ss:$0 sm:$0xff] }
 0x2cc   :  { %s1445_s11 = smov [#allocation14]  }
 0x2cd   :  { %s1157_s12 = sshll.u32 %s1445_s11, 4  ;;  %s1158_s12 = int_to_ptr.vmem [resolvable:$true] %s1157_s12 }
 0x2ce   :  { %s1399_s13 = scalar_lea.vmem %s1158_s12, 128  ;;  %p1404_p8 = scmp.lt.s32.totalorder %s1158_s12, %s1158_s12 }
 0x2cf   :  { %p1400_p7 = scmp.ne.s32.totalorder %s1158_s12, %s1399_s13  ;;  %p1405_p9 = scmp.lt.s32.totalorder %s1399_s13, %s1399_s13 }
 0x2d1   :  { %p1406_p10 = por %p1405_p9, %p1404_p8 }
 0x2d3   :  { %p1407_p11 = pnand %p1406_p10, %p1400_p7 }
 0x389   :  { %v1206_v5 = vpop.f32.mrf.mxu0  ;;  %v1241_v6 = vpop.f32.mrf.mxu1 }
 0x38b   :  { %v1207_v10 = vpop.f32.mrf.mxu0  ;;  %v1242_v8 = vpop.f32.mrf.mxu1 }
 0x38c   :  { %v1208_v11 = vadd.f32 %v1207_v10, %v1206_v5  ;;  %v1243_v13 = vadd.f32 %v1242_v8, %v1241_v6 }
 0x38e   :  { %v1067_v12 = vadd.f32 %v1208_v11, %v1173_v9 }
 0x390   :  { %v1137_v14 = vadd.f32 %v1243_v13, %v1067_v12 }
 0x392   :  { %1140 = vst [vmem:[#allocation14] sm:$0xff] %v1137_v14 }
 0x393   :  { %1410 = shalt.err (!%p1407_p11)
}
 0x394   :  { %1160 = dma.vmem_to_hbm [thread:$0]  %s1158_s12, 128, %s1574_s10, [#allocation15]  }
 0x395   :  { %1427 = dma.done.wait [#allocation4], 256  }
 0x396   :  { %1428 = vsyncadd [#allocation4], 4294967040 }
 0x397   :  { %1429 = dma.done.wait [#allocation15], 128  }
 0x398   :  { %1430 = vsyncadd [#allocation15], 4294967168 }
 0x399   :  { %1167 = vsyncpa [#allocation3], 1 }
 0x39a   :  { %1168 = vsyncpa [#allocation6], 1 }
 0x39b   :  { %1169 = vsyncpa [#allocation9], 1 }
 0x39c   :  { %1170 = vsyncpa [#allocation12], 1 }
 0x39d   :  { %1171 = vsyncpa [#allocation4], 1 }
 0x39e   :  { %1172 = vsyncpa [#allocation15], 1 }

</bundles_post_ra>
